<compile_context>
chip_gen: v7x
topology: tpu7x:2x2x1
jax: 0.10.0
libtpu: 0.0.40
codegen_flags: <defaults>
</compile_context>

<pallas_src>
import jax
import jax.numpy as jnp
from jax import lax
from jax.experimental import pallas as pl
from jax.experimental.pallas import tpu as pltpu

D = 768      # LSTM input size
H = 64       # LSTM hidden size
HP = 128     # hidden size padded to a full lane block
NCLS = 2     # linear output size
OUTP = 128   # lane-dense padded output width
G = 4 * HP   # padded gate width (i, f, g, o each at a 128-lane offset)


def lstm_classifier_kernel(x_ref, wih_ref, whh_ref, b_ref, wlin_ref, blin_ref,
                           out_ref, gx_ref):
    """Single-invocation kernel: big input projection + unrolled recurrence + head.

    x_ref   : (T, Bp, D)    bf16, time-major, batch padded to 8 sublanes
    wih_ref : (D, 4*HP)     bf16, W_ih^T with each gate lane-aligned at k*128
    whh_ref : (HP, 4*HP)    bf16, W_hh^T padded (rows 64..127 are zero)
    b_ref   : (1, 4*HP)     f32, (b_ih + b_hh) lane-aligned per gate
    wlin_ref: (HP, OUTP)    bf16, W_lin^T zero-padded
    blin_ref: (1, OUTP)     f32, b_lin zero-padded
    out_ref : (Bp, OUTP)    f32, sigmoid(logits); caller slices [:B, :2]
    gx_ref  : (T, Bp, 4*HP) f32 VMEM scratch holding the precomputed input gates
    """
    T, Bp, _ = x_ref.shape

    # ---- Stage 1: one big batched input projection (all timesteps at once). ----
    # (T, Bp, D) -> (T*Bp, D) is a free view (Bp is a full sublane tile).
    x_all = x_ref[...].reshape(T * Bp, D)                       # bf16, lane dim kept
    gx = jnp.dot(x_all, wih_ref[...], preferred_element_type=jnp.float32)
    gx_ref[...] = (gx + b_ref[...]).reshape(T, Bp, G)           # f32 gates_x + bias

    whh = whh_ref[...]                                          # (HP, G) bf16, resident

    # ---- Stage 2: sequential recurrence; only the tiny hidden matmul per step. ----
    def step(t, carry):
        h, c = carry                                            # f32 (Bp, HP)
        gates = gx_ref[t] + jnp.dot(h.astype(jnp.bfloat16), whh,
                                    preferred_element_type=jnp.float32)
        # Lane-aligned 128-wide gate blocks -> free slices; sigmoid/tanh go to EUP.
        i_g = jax.nn.sigmoid(gates[:, 0 * HP:1 * HP])
        f_g = jax.nn.sigmoid(gates[:, 1 * HP:2 * HP])
        g_g = jnp.tanh(gates[:, 2 * HP:3 * HP])
        o_g = jax.nn.sigmoid(gates[:, 3 * HP:4 * HP])
        c_new = f_g * c + i_g * g_g
        h_new = o_g * jnp.tanh(c_new)
        return h_new, c_new

    h0 = jnp.zeros((Bp, HP), jnp.float32)
    c0 = jnp.zeros((Bp, HP), jnp.float32)
    h, _ = lax.fori_loop(0, T, step, (h0, c0), unroll=True)

    # ---- Stage 3: classifier head, lane-dense store. ----
    logits = jnp.dot(h.astype(jnp.bfloat16), wlin_ref[...],
                     preferred_element_type=jnp.float32) + blin_ref[...]
    out_ref[...] = jax.nn.sigmoid(logits)


def _pack_gate_cols(w):
    """(rows, 4*H) gate-major columns -> (rows, 4*HP), gate k at lane offset k*HP."""
    rows = w.shape[0]
    out = jnp.zeros((rows, G), w.dtype)
    for k in range(4):
        out = out.at[:, k * HP:k * HP + H].set(w[:, k * H:(k + 1) * H])
    return out


def classifier_embed_forward(x, params):
    """x: (B, T, D) float32 (batch_first, matching PyTorch). Returns (B, 2)."""
    B, T, _ = x.shape
    Bp = max(8, ((B + 7) // 8) * 8)                             # sublane-pad batch

    # Pad batch, go time-major, cast MXU operands to bf16 (tiny one-time cost;
    # there is no per-step x DMA -- everything lands in VMEM once).
    x_p = jnp.pad(x, ((0, Bp - B), (0, 0), (0, 0)))
    x_tm = jnp.transpose(x_p, (1, 0, 2)).astype(jnp.bfloat16)   # (T, Bp, D)

    wih = _pack_gate_cols(params["w_ih"].T).astype(jnp.bfloat16)          # (D, G)
    whh = jnp.zeros((HP, G), jnp.float32)
    whh = whh.at[:H].set(_pack_gate_cols(params["w_hh"].T)).astype(jnp.bfloat16)
    bias = _pack_gate_cols((params["b_ih"] + params["b_hh"]).reshape(1, 4 * H))
    wlin = jnp.zeros((HP, OUTP), jnp.float32)
    wlin = wlin.at[:H, :NCLS].set(params["w_lin"].T).astype(jnp.bfloat16)
    blin = jnp.zeros((1, OUTP), jnp.float32).at[0, :NCLS].set(params["b_lin"])

    out_padded = pl.pallas_call(
        lstm_classifier_kernel,
        out_shape=jax.ShapeDtypeStruct((Bp, OUTP), jnp.float32),
        grid_spec=pltpu.PrefetchScalarGridSpec(
            num_scalar_prefetch=0,
            grid=(1,),
            in_specs=[
                pl.BlockSpec((T, Bp, D), lambda i: (0, 0, 0)),   # x (time-major)
                pl.BlockSpec((D, G), lambda i: (0, 0)),          # W_ih^T packed
                pl.BlockSpec((HP, G), lambda i: (0, 0)),         # W_hh^T packed
                pl.BlockSpec((1, G), lambda i: (0, 0)),          # bias packed
                pl.BlockSpec((HP, OUTP), lambda i: (0, 0)),      # W_lin^T padded
                pl.BlockSpec((1, OUTP), lambda i: (0, 0)),       # b_lin padded
            ],
            out_specs=pl.BlockSpec((Bp, OUTP), lambda i: (0, 0)),
            scratch_shapes=[
                pltpu.VMEM((T, Bp, G), jnp.float32),             # precomputed gates_x
            ],
        ),
        compiler_params=pltpu.CompilerParams(
            dimension_semantics=("arbitrary",)),
    )(x_tm, wih, whh, bias, wlin, blin)

    return out_padded[:B, :NCLS]


def reference_forward(x, params):
    """Pure-JAX f32 reference of the PyTorch module for correctness checking."""
    def step(carry, x_t):
        h, c = carry
        gates = x_t @ params["w_ih"].T + h @ params["w_hh"].T \
            + params["b_ih"] + params["b_hh"]
        i_g = jax.nn.sigmoid(gates[:, 0 * H:1 * H])
        f_g = jax.nn.sigmoid(gates[:, 1 * H:2 * H])
        g_g = jnp.tanh(gates[:, 2 * H:3 * H])
        o_g = jax.nn.sigmoid(gates[:, 3 * H:4 * H])
        c_new = f_g * c + i_g * g_g
        h_new = o_g * jnp.tanh(c_new)
        return (h_new, c_new), None

    B = x.shape[0]
    h0 = jnp.zeros((B, H), jnp.float32)
    c0 = jnp.zeros((B, H), jnp.float32)
    (h, _), _ = jax.lax.scan(step, (h0, c0), jnp.transpose(x, (1, 0, 2)))
    logits = h @ params["w_lin"].T + params["b_lin"]
    return jax.nn.sigmoid(logits)


def init_params(key):
    """Deterministic synthetic parameters with the shapes of the PyTorch module."""
    ks = jax.random.split(key, 6)
    scale = 1.0 / jnp.sqrt(jnp.float32(H))  # matches nn.LSTM / nn.Linear init range
    return {
        "w_ih": jax.random.uniform(ks[0], (4 * H, D), jnp.float32, -scale, scale),
        "w_hh": jax.random.uniform(ks[1], (4 * H, H), jnp.float32, -scale, scale),
        "b_ih": jax.random.uniform(ks[2], (4 * H,), jnp.float32, -scale, scale),
        "b_hh": jax.random.uniform(ks[3], (4 * H,), jnp.float32, -scale, scale),
        "w_lin": jax.random.uniform(ks[4], (NCLS, H), jnp.float32, -scale, scale),
        "b_lin": jax.random.uniform(ks[5], (NCLS,), jnp.float32, -scale, scale),
    }


if __name__ == "__main__":
    key = jax.random.PRNGKey(0)
    k_x, k_p = jax.random.split(key)

    B, T = 4, 8                                   # small batch / sequence length
    x = jax.random.normal(k_x, (B, T, D), jnp.float32)
    params = init_params(k_p)

    fwd = jax.jit(classifier_embed_forward)       # fuse the cheap pre/post layout ops
    out = jax.block_until_ready(fwd(x, params))

    ref = jax.block_until_ready(reference_forward(x, params))
    assert out.shape == (B, NCLS)
    # bf16 MXU operands with f32 accumulation: errors are well below 1e-2 at this
    # depth; 2e-2 tolerance gives margin over the f32 reference.
    assert jnp.allclose(out, ref, atol=2e-2), "Pallas kernel mismatch vs JAX reference"

    print("KERNEL_OK")
</pallas_src>

<mosaic_0001>
module attributes {stable_mosaic.version = 11 : i64} {
  func.func @lstm_classifier_kernel(%arg0: i32, %arg1: memref<8x8x768xbf16, #tpu.memory_space<vmem>>, %arg2: memref<768x512xbf16, #tpu.memory_space<vmem>>, %arg3: memref<128x512xbf16, #tpu.memory_space<vmem>>, %arg4: memref<1x512xf32, #tpu.memory_space<vmem>>, %arg5: memref<128x128xbf16, #tpu.memory_space<vmem>>, %arg6: memref<1x128xf32, #tpu.memory_space<vmem>>, %arg7: memref<8x128xf32, #tpu.memory_space<vmem>>, %arg8: memref<8x8x512xf32, #tpu.memory_space<vmem>>) attributes {dimension_semantics = [#tpu.dimension_semantics<arbitrary>], iteration_bounds = array<i64: 1>, scalar_prefetch = 0 : i64, scratch_operands = 1 : i64, tpu.core_type = #tpu.core_type<tc>, window_params = [{pipeline_mode = #tpu.pipeline_mode<synchronous>, transform_indices = @transform_0, window_bounds = array<i64: 8, 8, 768>}, {pipeline_mode = #tpu.pipeline_mode<synchronous>, transform_indices = @transform_1, window_bounds = array<i64: 768, 512>}, {pipeline_mode = #tpu.pipeline_mode<synchronous>, transform_indices = @transform_2, window_bounds = array<i64: 128, 512>}, {pipeline_mode = #tpu.pipeline_mode<synchronous>, transform_indices = @transform_3, window_bounds = array<i64: 1, 512>}, {pipeline_mode = #tpu.pipeline_mode<synchronous>, transform_indices = @transform_4, window_bounds = array<i64: 128, 128>}, {pipeline_mode = #tpu.pipeline_mode<synchronous>, transform_indices = @transform_5, window_bounds = array<i64: 1, 128>}, {pipeline_mode = #tpu.pipeline_mode<synchronous>, transform_indices = @transform_6, window_bounds = array<i64: 8, 128>}]} {
    %c0 = arith.constant 0 : index
    %c0_0 = arith.constant 0 : index
    %c0_1 = arith.constant 0 : index
    %0 = vector.load %arg1[%c0, %c0_0, %c0_1] : memref<8x8x768xbf16, #tpu.memory_space<vmem>>, vector<8x8x768xbf16>
    %1 = vector.shape_cast %0 : vector<8x8x768xbf16> to vector<64x768xbf16>
    %c0_2 = arith.constant 0 : index
    %c0_3 = arith.constant 0 : index
    %2 = vector.load %arg2[%c0_2, %c0_3] : memref<768x512xbf16, #tpu.memory_space<vmem>>, vector<768x512xbf16>
    %cst = arith.constant dense<0.000000e+00> : vector<64x512xf32>
    %3 = tpu.matmul %1, %2, %cst {dimension_numbers = #tpu.dot_dimension_numbers<[1], [0], [0], [1], [0, 0, 1, 1], [], []>} : vector<64x768xbf16>, vector<768x512xbf16>, vector<64x512xf32> -> vector<64x512xf32>
    %c0_4 = arith.constant 0 : index
    %c0_5 = arith.constant 0 : index
    %4 = vector.load %arg4[%c0_4, %c0_5] : memref<1x512xf32, #tpu.memory_space<vmem>>, vector<1x512xf32>
    %5 = vector.broadcast %4 : vector<1x512xf32> to vector<64x512xf32>
    %6 = arith.addf %3, %5 : vector<64x512xf32>
    %7 = vector.shape_cast %6 : vector<64x512xf32> to vector<8x8x512xf32>
    %c0_6 = arith.constant 0 : index
    %c0_7 = arith.constant 0 : index
    %c0_8 = arith.constant 0 : index
    %8 = vector.load %arg8[%c0_6, %c0_7, %c0_8] : memref<8x8x512xf32, #tpu.memory_space<vmem>>, vector<8x8x512xf32>
    tpu.vector_store %arg8[%c0_6, %c0_7, %c0_8], %7 {strides = array<i32>} : memref<8x8x512xf32, #tpu.memory_space<vmem>>, vector<8x8x512xf32>,
    %c0_9 = arith.constant 0 : index
    %c0_10 = arith.constant 0 : index
    %9 = vector.load %arg3[%c0_9, %c0_10] : memref<128x512xbf16, #tpu.memory_space<vmem>>, vector<128x512xbf16>
    %cst_11 = arith.constant 0.000000e+00 : f32
    %10 = vector.broadcast %cst_11 : f32 to vector<8x128xf32>
    %cst_12 = arith.constant 0.000000e+00 : f32
    %11 = vector.broadcast %cst_12 : f32 to vector<8x128xf32>
    %c0_i32 = arith.constant 0 : i32
    %12 = arith.index_cast %c0_i32 : i32 to index
    %c0_13 = arith.constant 0 : index
    %c0_14 = arith.constant 0 : index
    %13 = vector.load %arg8[%12, %c0_13, %c0_14] : memref<8x8x512xf32, #tpu.memory_space<vmem>>, vector<1x8x512xf32>
    %14 = vector.shape_cast %13 : vector<1x8x512xf32> to vector<8x512xf32>
    %15 = arith.truncf %10 : vector<8x128xf32> to vector<8x128xbf16>
    %cst_15 = arith.constant dense<0.000000e+00> : vector<8x512xf32>
    %16 = tpu.matmul %15, %9, %cst_15 {dimension_numbers = #tpu.dot_dimension_numbers<[1], [0], [0], [1], [0, 0, 1, 1], [], []>} : vector<8x128xbf16>, vector<128x512xbf16>, vector<8x512xf32> -> vector<8x512xf32>
    %17 = arith.addf %14, %16 : vector<8x512xf32>
    %18 = vector.extract_strided_slice %17 {offsets = [0, 0], sizes = [8, 128], strides = [1, 1]} : vector<8x512xf32> to vector<8x128xf32>
    %19 = arith.negf %18 : vector<8x128xf32>
    %20 = math.exp %19 : vector<8x128xf32>
    %cst_16 = arith.constant 1.000000e+00 : f32
    %21 = vector.broadcast %cst_16 : f32 to vector<8x128xf32>
    %22 = arith.addf %21, %20 : vector<8x128xf32>
    %23 = arith.divf %21, %22 : vector<8x128xf32>
    %24 = vector.extract_strided_slice %17 {offsets = [0, 128], sizes = [8, 128], strides = [1, 1]} : vector<8x512xf32> to vector<8x128xf32>
    %25 = arith.negf %24 : vector<8x128xf32>
    %26 = math.exp %25 : vector<8x128xf32>
    %cst_17 = arith.constant 1.000000e+00 : f32
    %27 = vector.broadcast %cst_17 : f32 to vector<8x128xf32>
    %28 = arith.addf %27, %26 : vector<8x128xf32>
    %29 = arith.divf %27, %28 : vector<8x128xf32>
    %30 = vector.extract_strided_slice %17 {offsets = [0, 256], sizes = [8, 128], strides = [1, 1]} : vector<8x512xf32> to vector<8x128xf32>
    %31 = math.tanh %30 : vector<8x128xf32>
    %32 = vector.extract_strided_slice %17 {offsets = [0, 384], sizes = [8, 128], strides = [1, 1]} : vector<8x512xf32> to vector<8x128xf32>
    %33 = arith.negf %32 : vector<8x128xf32>
    %34 = math.exp %33 : vector<8x128xf32>
    %cst_18 = arith.constant 1.000000e+00 : f32
    %35 = vector.broadcast %cst_18 : f32 to vector<8x128xf32>
    %36 = arith.addf %35, %34 : vector<8x128xf32>
    %37 = arith.divf %35, %36 : vector<8x128xf32>
    %38 = arith.mulf %29, %11 : vector<8x128xf32>
    %39 = arith.mulf %23, %31 : vector<8x128xf32>
    %40 = arith.addf %38, %39 : vector<8x128xf32>
    %41 = math.tanh %40 : vector<8x128xf32>
    %42 = arith.mulf %37, %41 : vector<8x128xf32>
    %c1_i32 = arith.constant 1 : i32
    %43 = arith.index_cast %c1_i32 : i32 to index
    %c0_19 = arith.constant 0 : index
    %c0_20 = arith.constant 0 : index
    %44 = vector.load %arg8[%43, %c0_19, %c0_20] : memref<8x8x512xf32, #tpu.memory_space<vmem>>, vector<1x8x512xf32>
    %45 = vector.shape_cast %44 : vector<1x8x512xf32> to vector<8x512xf32>
    %46 = arith.truncf %42 : vector<8x128xf32> to vector<8x128xbf16>
    %cst_21 = arith.constant dense<0.000000e+00> : vector<8x512xf32>
    %47 = tpu.matmul %46, %9, %cst_21 {dimension_numbers = #tpu.dot_dimension_numbers<[1], [0], [0], [1], [0, 0, 1, 1], [], []>} : vector<8x128xbf16>, vector<128x512xbf16>, vector<8x512xf32> -> vector<8x512xf32>
    %48 = arith.addf %45, %47 : vector<8x512xf32>
    %49 = vector.extract_strided_slice %48 {offsets = [0, 0], sizes = [8, 128], strides = [1, 1]} : vector<8x512xf32> to vector<8x128xf32>
    %50 = arith.negf %49 : vector<8x128xf32>
    %51 = math.exp %50 : vector<8x128xf32>
    %cst_22 = arith.constant 1.000000e+00 : f32
    %52 = vector.broadcast %cst_22 : f32 to vector<8x128xf32>
    %53 = arith.addf %52, %51 : vector<8x128xf32>
    %54 = arith.divf %52, %53 : vector<8x128xf32>
    %55 = vector.extract_strided_slice %48 {offsets = [0, 128], sizes = [8, 128], strides = [1, 1]} : vector<8x512xf32> to vector<8x128xf32>
    %56 = arith.negf %55 : vector<8x128xf32>
    %57 = math.exp %56 : vector<8x128xf32>
    %cst_23 = arith.constant 1.000000e+00 : f32
    %58 = vector.broadcast %cst_23 : f32 to vector<8x128xf32>
    %59 = arith.addf %58, %57 : vector<8x128xf32>
    %60 = arith.divf %58, %59 : vector<8x128xf32>
    %61 = vector.extract_strided_slice %48 {offsets = [0, 256], sizes = [8, 128], strides = [1, 1]} : vector<8x512xf32> to vector<8x128xf32>
    %62 = math.tanh %61 : vector<8x128xf32>
    %63 = vector.extract_strided_slice %48 {offsets = [0, 384], sizes = [8, 128], strides = [1, 1]} : vector<8x512xf32> to vector<8x128xf32>
    %64 = arith.negf %63 : vector<8x128xf32>
    %65 = math.exp %64 : vector<8x128xf32>
    %cst_24 = arith.constant 1.000000e+00 : f32
    %66 = vector.broadcast %cst_24 : f32 to vector<8x128xf32>
    %67 = arith.addf %66, %65 : vector<8x128xf32>
    %68 = arith.divf %66, %67 : vector<8x128xf32>
    %69 = arith.mulf %60, %40 : vector<8x128xf32>
    %70 = arith.mulf %54, %62 : vector<8x128xf32>
    %71 = arith.addf %69, %70 : vector<8x128xf32>
    %72 = math.tanh %71 : vector<8x128xf32>
    %73 = arith.mulf %68, %72 : vector<8x128xf32>
    %c2_i32 = arith.constant 2 : i32
    %74 = arith.index_cast %c2_i32 : i32 to index
    %c0_25 = arith.constant 0 : index
    %c0_26 = arith.constant 0 : index
    %75 = vector.load %arg8[%74, %c0_25, %c0_26] : memref<8x8x512xf32, #tpu.memory_space<vmem>>, vector<1x8x512xf32>
    %76 = vector.shape_cast %75 : vector<1x8x512xf32> to vector<8x512xf32>
    %77 = arith.truncf %73 : vector<8x128xf32> to vector<8x128xbf16>
    %cst_27 = arith.constant dense<0.000000e+00> : vector<8x512xf32>
    %78 = tpu.matmul %77, %9, %cst_27 {dimension_numbers = #tpu.dot_dimension_numbers<[1], [0], [0], [1], [0, 0, 1, 1], [], []>} : vector<8x128xbf16>, vector<128x512xbf16>, vector<8x512xf32> -> vector<8x512xf32>
    %79 = arith.addf %76, %78 : vector<8x512xf32>
    %80 = vector.extract_strided_slice %79 {offsets = [0, 0], sizes = [8, 128], strides = [1, 1]} : vector<8x512xf32> to vector<8x128xf32>
    %81 = arith.negf %80 : vector<8x128xf32>
    %82 = math.exp %81 : vector<8x128xf32>
    %cst_28 = arith.constant 1.000000e+00 : f32
    %83 = vector.broadcast %cst_28 : f32 to vector<8x128xf32>
    %84 = arith.addf %83, %82 : vector<8x128xf32>
    %85 = arith.divf %83, %84 : vector<8x128xf32>
    %86 = vector.extract_strided_slice %79 {offsets = [0, 128], sizes = [8, 128], strides = [1, 1]} : vector<8x512xf32> to vector<8x128xf32>
    %87 = arith.negf %86 : vector<8x128xf32>
    %88 = math.exp %87 : vector<8x128xf32>
    %cst_29 = arith.constant 1.000000e+00 : f32
    %89 = vector.broadcast %cst_29 : f32 to vector<8x128xf32>
    %90 = arith.addf %89, %88 : vector<8x128xf32>
    %91 = arith.divf %89, %90 : vector<8x128xf32>
    %92 = vector.extract_strided_slice %79 {offsets = [0, 256], sizes = [8, 128], strides = [1, 1]} : vector<8x512xf32> to vector<8x128xf32>
    %93 = math.tanh %92 : vector<8x128xf32>
    %94 = vector.extract_strided_slice %79 {offsets = [0, 384], sizes = [8, 128], strides = [1, 1]} : vector<8x512xf32> to vector<8x128xf32>
    %95 = arith.negf %94 : vector<8x128xf32>
    %96 = math.exp %95 : vector<8x128xf32>
    %cst_30 = arith.constant 1.000000e+00 : f32
    %97 = vector.broadcast %cst_30 : f32 to vector<8x128xf32>
    %98 = arith.addf %97, %96 : vector<8x128xf32>
    %99 = arith.divf %97, %98 : vector<8x128xf32>
    %100 = arith.mulf %91, %71 : vector<8x128xf32>
    %101 = arith.mulf %85, %93 : vector<8x128xf32>
    %102 = arith.addf %100, %101 : vector<8x128xf32>
    %103 = math.tanh %102 : vector<8x128xf32>
    %104 = arith.mulf %99, %103 : vector<8x128xf32>
    %c3_i32 = arith.constant 3 : i32
    %105 = arith.index_cast %c3_i32 : i32 to index
    %c0_31 = arith.constant 0 : index
    %c0_32 = arith.constant 0 : index
    %106 = vector.load %arg8[%105, %c0_31, %c0_32] : memref<8x8x512xf32, #tpu.memory_space<vmem>>, vector<1x8x512xf32>
    %107 = vector.shape_cast %106 : vector<1x8x512xf32> to vector<8x512xf32>
    %108 = arith.truncf %104 : vector<8x128xf32> to vector<8x128xbf16>
    %cst_33 = arith.constant dense<0.000000e+00> : vector<8x512xf32>
    %109 = tpu.matmul %108, %9, %cst_33 {dimension_numbers = #tpu.dot_dimension_numbers<[1], [0], [0], [1], [0, 0, 1, 1], [], []>} : vector<8x128xbf16>, vector<128x512xbf16>, vector<8x512xf32> -> vector<8x512xf32>
    %110 = arith.addf %107, %109 : vector<8x512xf32>
    %111 = vector.extract_strided_slice %110 {offsets = [0, 0], sizes = [8, 128], strides = [1, 1]} : vector<8x512xf32> to vector<8x128xf32>
    %112 = arith.negf %111 : vector<8x128xf32>
    %113 = math.exp %112 : vector<8x128xf32>
    %cst_34 = arith.constant 1.000000e+00 : f32
    %114 = vector.broadcast %cst_34 : f32 to vector<8x128xf32>
    %115 = arith.addf %114, %113 : vector<8x128xf32>
    %116 = arith.divf %114, %115 : vector<8x128xf32>
    %117 = vector.extract_strided_slice %110 {offsets = [0, 128], sizes = [8, 128], strides = [1, 1]} : vector<8x512xf32> to vector<8x128xf32>
    %118 = arith.negf %117 : vector<8x128xf32>
    %119 = math.exp %118 : vector<8x128xf32>
    %cst_35 = arith.constant 1.000000e+00 : f32
    %120 = vector.broadcast %cst_35 : f32 to vector<8x128xf32>
    %121 = arith.addf %120, %119 : vector<8x128xf32>
    %122 = arith.divf %120, %121 : vector<8x128xf32>
    %123 = vector.extract_strided_slice %110 {offsets = [0, 256], sizes = [8, 128], strides = [1, 1]} : vector<8x512xf32> to vector<8x128xf32>
    %124 = math.tanh %123 : vector<8x128xf32>
    %125 = vector.extract_strided_slice %110 {offsets = [0, 384], sizes = [8, 128], strides = [1, 1]} : vector<8x512xf32> to vector<8x128xf32>
    %126 = arith.negf %125 : vector<8x128xf32>
    %127 = math.exp %126 : vector<8x128xf32>
    %cst_36 = arith.constant 1.000000e+00 : f32
    %128 = vector.broadcast %cst_36 : f32 to vector<8x128xf32>
    %129 = arith.addf %128, %127 : vector<8x128xf32>
    %130 = arith.divf %128, %129 : vector<8x128xf32>
    %131 = arith.mulf %122, %102 : vector<8x128xf32>
    %132 = arith.mulf %116, %124 : vector<8x128xf32>
    %133 = arith.addf %131, %132 : vector<8x128xf32>
    %134 = math.tanh %133 : vector<8x128xf32>
    %135 = arith.mulf %130, %134 : vector<8x128xf32>
    %c4_i32 = arith.constant 4 : i32
    %136 = arith.index_cast %c4_i32 : i32 to index
    %c0_37 = arith.constant 0 : index
    %c0_38 = arith.constant 0 : index
    %137 = vector.load %arg8[%136, %c0_37, %c0_38] : memref<8x8x512xf32, #tpu.memory_space<vmem>>, vector<1x8x512xf32>
    %138 = vector.shape_cast %137 : vector<1x8x512xf32> to vector<8x512xf32>
    %139 = arith.truncf %135 : vector<8x128xf32> to vector<8x128xbf16>
    %cst_39 = arith.constant dense<0.000000e+00> : vector<8x512xf32>
    %140 = tpu.matmul %139, %9, %cst_39 {dimension_numbers = #tpu.dot_dimension_numbers<[1], [0], [0], [1], [0, 0, 1, 1], [], []>} : vector<8x128xbf16>, vector<128x512xbf16>, vector<8x512xf32> -> vector<8x512xf32>
    %141 = arith.addf %138, %140 : vector<8x512xf32>
    %142 = vector.extract_strided_slice %141 {offsets = [0, 0], sizes = [8, 128], strides = [1, 1]} : vector<8x512xf32> to vector<8x128xf32>
    %143 = arith.negf %142 : vector<8x128xf32>
    %144 = math.exp %143 : vector<8x128xf32>
    %cst_40 = arith.constant 1.000000e+00 : f32
    %145 = vector.broadcast %cst_40 : f32 to vector<8x128xf32>
    %146 = arith.addf %145, %144 : vector<8x128xf32>
    %147 = arith.divf %145, %146 : vector<8x128xf32>
    %148 = vector.extract_strided_slice %141 {offsets = [0, 128], sizes = [8, 128], strides = [1, 1]} : vector<8x512xf32> to vector<8x128xf32>
    %149 = arith.negf %148 : vector<8x128xf32>
    %150 = math.exp %149 : vector<8x128xf32>
    %cst_41 = arith.constant 1.000000e+00 : f32
    %151 = vector.broadcast %cst_41 : f32 to vector<8x128xf32>
    %152 = arith.addf %151, %150 : vector<8x128xf32>
    %153 = arith.divf %151, %152 : vector<8x128xf32>
    %154 = vector.extract_strided_slice %141 {offsets = [0, 256], sizes = [8, 128], strides = [1, 1]} : vector<8x512xf32> to vector<8x128xf32>
    %155 = math.tanh %154 : vector<8x128xf32>
    %156 = vector.extract_strided_slice %141 {offsets = [0, 384], sizes = [8, 128], strides = [1, 1]} : vector<8x512xf32> to vector<8x128xf32>
    %157 = arith.negf %156 : vector<8x128xf32>
    %158 = math.exp %157 : vector<8x128xf32>
    %cst_42 = arith.constant 1.000000e+00 : f32
    %159 = vector.broadcast %cst_42 : f32 to vector<8x128xf32>
    %160 = arith.addf %159, %158 : vector<8x128xf32>
    %161 = arith.divf %159, %160 : vector<8x128xf32>
    %162 = arith.mulf %153, %133 : vector<8x128xf32>
    %163 = arith.mulf %147, %155 : vector<8x128xf32>
    %164 = arith.addf %162, %163 : vector<8x128xf32>
    %165 = math.tanh %164 : vector<8x128xf32>
    %166 = arith.mulf %161, %165 : vector<8x128xf32>
    %c5_i32 = arith.constant 5 : i32
    %167 = arith.index_cast %c5_i32 : i32 to index
    %c0_43 = arith.constant 0 : index
    %c0_44 = arith.constant 0 : index
    %168 = vector.load %arg8[%167, %c0_43, %c0_44] : memref<8x8x512xf32, #tpu.memory_space<vmem>>, vector<1x8x512xf32>
    %169 = vector.shape_cast %168 : vector<1x8x512xf32> to vector<8x512xf32>
    %170 = arith.truncf %166 : vector<8x128xf32> to vector<8x128xbf16>
    %cst_45 = arith.constant dense<0.000000e+00> : vector<8x512xf32>
    %171 = tpu.matmul %170, %9, %cst_45 {dimension_numbers = #tpu.dot_dimension_numbers<[1], [0], [0], [1], [0, 0, 1, 1], [], []>} : vector<8x128xbf16>, vector<128x512xbf16>, vector<8x512xf32> -> vector<8x512xf32>
    %172 = arith.addf %169, %171 : vector<8x512xf32>
    %173 = vector.extract_strided_slice %172 {offsets = [0, 0], sizes = [8, 128], strides = [1, 1]} : vector<8x512xf32> to vector<8x128xf32>
    %174 = arith.negf %173 : vector<8x128xf32>
    %175 = math.exp %174 : vector<8x128xf32>
    %cst_46 = arith.constant 1.000000e+00 : f32
    %176 = vector.broadcast %cst_46 : f32 to vector<8x128xf32>
    %177 = arith.addf %176, %175 : vector<8x128xf32>
    %178 = arith.divf %176, %177 : vector<8x128xf32>
    %179 = vector.extract_strided_slice %172 {offsets = [0, 128], sizes = [8, 128], strides = [1, 1]} : vector<8x512xf32> to vector<8x128xf32>
    %180 = arith.negf %179 : vector<8x128xf32>
    %181 = math.exp %180 : vector<8x128xf32>
    %cst_47 = arith.constant 1.000000e+00 : f32
    %182 = vector.broadcast %cst_47 : f32 to vector<8x128xf32>
    %183 = arith.addf %182, %181 : vector<8x128xf32>
    %184 = arith.divf %182, %183 : vector<8x128xf32>
    %185 = vector.extract_strided_slice %172 {offsets = [0, 256], sizes = [8, 128], strides = [1, 1]} : vector<8x512xf32> to vector<8x128xf32>
    %186 = math.tanh %185 : vector<8x128xf32>
    %187 = vector.extract_strided_slice %172 {offsets = [0, 384], sizes = [8, 128], strides = [1, 1]} : vector<8x512xf32> to vector<8x128xf32>
    %188 = arith.negf %187 : vector<8x128xf32>
    %189 = math.exp %188 : vector<8x128xf32>
    %cst_48 = arith.constant 1.000000e+00 : f32
    %190 = vector.broadcast %cst_48 : f32 to vector<8x128xf32>
    %191 = arith.addf %190, %189 : vector<8x128xf32>
    %192 = arith.divf %190, %191 : vector<8x128xf32>
    %193 = arith.mulf %184, %164 : vector<8x128xf32>
    %194 = arith.mulf %178, %186 : vector<8x128xf32>
    %195 = arith.addf %193, %194 : vector<8x128xf32>
    %196 = math.tanh %195 : vector<8x128xf32>
    %197 = arith.mulf %192, %196 : vector<8x128xf32>
    %c6_i32 = arith.constant 6 : i32
    %198 = arith.index_cast %c6_i32 : i32 to index
    %c0_49 = arith.constant 0 : index
    %c0_50 = arith.constant 0 : index
    %199 = vector.load %arg8[%198, %c0_49, %c0_50] : memref<8x8x512xf32, #tpu.memory_space<vmem>>, vector<1x8x512xf32>
    %200 = vector.shape_cast %199 : vector<1x8x512xf32> to vector<8x512xf32>
    %201 = arith.truncf %197 : vector<8x128xf32> to vector<8x128xbf16>
    %cst_51 = arith.constant dense<0.000000e+00> : vector<8x512xf32>
    %202 = tpu.matmul %201, %9, %cst_51 {dimension_numbers = #tpu.dot_dimension_numbers<[1], [0], [0], [1], [0, 0, 1, 1], [], []>} : vector<8x128xbf16>, vector<128x512xbf16>, vector<8x512xf32> -> vector<8x512xf32>
    %203 = arith.addf %200, %202 : vector<8x512xf32>
    %204 = vector.extract_strided_slice %203 {offsets = [0, 0], sizes = [8, 128], strides = [1, 1]} : vector<8x512xf32> to vector<8x128xf32>
    %205 = arith.negf %204 : vector<8x128xf32>
    %206 = math.exp %205 : vector<8x128xf32>
    %cst_52 = arith.constant 1.000000e+00 : f32
    %207 = vector.broadcast %cst_52 : f32 to vector<8x128xf32>
    %208 = arith.addf %207, %206 : vector<8x128xf32>
    %209 = arith.divf %207, %208 : vector<8x128xf32>
    %210 = vector.extract_strided_slice %203 {offsets = [0, 128], sizes = [8, 128], strides = [1, 1]} : vector<8x512xf32> to vector<8x128xf32>
    %211 = arith.negf %210 : vector<8x128xf32>
    %212 = math.exp %211 : vector<8x128xf32>
    %cst_53 = arith.constant 1.000000e+00 : f32
    %213 = vector.broadcast %cst_53 : f32 to vector<8x128xf32>
    %214 = arith.addf %213, %212 : vector<8x128xf32>
    %215 = arith.divf %213, %214 : vector<8x128xf32>
    %216 = vector.extract_strided_slice %203 {offsets = [0, 256], sizes = [8, 128], strides = [1, 1]} : vector<8x512xf32> to vector<8x128xf32>
    %217 = math.tanh %216 : vector<8x128xf32>
    %218 = vector.extract_strided_slice %203 {offsets = [0, 384], sizes = [8, 128], strides = [1, 1]} : vector<8x512xf32> to vector<8x128xf32>
    %219 = arith.negf %218 : vector<8x128xf32>
    %220 = math.exp %219 : vector<8x128xf32>
    %cst_54 = arith.constant 1.000000e+00 : f32
    %221 = vector.broadcast %cst_54 : f32 to vector<8x128xf32>
    %222 = arith.addf %221, %220 : vector<8x128xf32>
    %223 = arith.divf %221, %222 : vector<8x128xf32>
    %224 = arith.mulf %215, %195 : vector<8x128xf32>
    %225 = arith.mulf %209, %217 : vector<8x128xf32>
    %226 = arith.addf %224, %225 : vector<8x128xf32>
    %227 = math.tanh %226 : vector<8x128xf32>
    %228 = arith.mulf %223, %227 : vector<8x128xf32>
    %c7_i32 = arith.constant 7 : i32
    %229 = arith.index_cast %c7_i32 : i32 to index
    %c0_55 = arith.constant 0 : index
    %c0_56 = arith.constant 0 : index
    %230 = vector.load %arg8[%229, %c0_55, %c0_56] : memref<8x8x512xf32, #tpu.memory_space<vmem>>, vector<1x8x512xf32>
    %231 = vector.shape_cast %230 : vector<1x8x512xf32> to vector<8x512xf32>
    %232 = arith.truncf %228 : vector<8x128xf32> to vector<8x128xbf16>
    %cst_57 = arith.constant dense<0.000000e+00> : vector<8x512xf32>
    %233 = tpu.matmul %232, %9, %cst_57 {dimension_numbers = #tpu.dot_dimension_numbers<[1], [0], [0], [1], [0, 0, 1, 1], [], []>} : vector<8x128xbf16>, vector<128x512xbf16>, vector<8x512xf32> -> vector<8x512xf32>
    %234 = arith.addf %231, %233 : vector<8x512xf32>
    %235 = vector.extract_strided_slice %234 {offsets = [0, 0], sizes = [8, 128], strides = [1, 1]} : vector<8x512xf32> to vector<8x128xf32>
    %236 = arith.negf %235 : vector<8x128xf32>
    %237 = math.exp %236 : vector<8x128xf32>
    %cst_58 = arith.constant 1.000000e+00 : f32
    %238 = vector.broadcast %cst_58 : f32 to vector<8x128xf32>
    %239 = arith.addf %238, %237 : vector<8x128xf32>
    %240 = arith.divf %238, %239 : vector<8x128xf32>
    %241 = vector.extract_strided_slice %234 {offsets = [0, 128], sizes = [8, 128], strides = [1, 1]} : vector<8x512xf32> to vector<8x128xf32>
    %242 = arith.negf %241 : vector<8x128xf32>
    %243 = math.exp %242 : vector<8x128xf32>
    %cst_59 = arith.constant 1.000000e+00 : f32
    %244 = vector.broadcast %cst_59 : f32 to vector<8x128xf32>
    %245 = arith.addf %244, %243 : vector<8x128xf32>
    %246 = arith.divf %244, %245 : vector<8x128xf32>
    %247 = vector.extract_strided_slice %234 {offsets = [0, 256], sizes = [8, 128], strides = [1, 1]} : vector<8x512xf32> to vector<8x128xf32>
    %248 = math.tanh %247 : vector<8x128xf32>
    %249 = vector.extract_strided_slice %234 {offsets = [0, 384], sizes = [8, 128], strides = [1, 1]} : vector<8x512xf32> to vector<8x128xf32>
    %250 = arith.negf %249 : vector<8x128xf32>
    %251 = math.exp %250 : vector<8x128xf32>
    %cst_60 = arith.constant 1.000000e+00 : f32
    %252 = vector.broadcast %cst_60 : f32 to vector<8x128xf32>
    %253 = arith.addf %252, %251 : vector<8x128xf32>
    %254 = arith.divf %252, %253 : vector<8x128xf32>
    %255 = arith.mulf %246, %226 : vector<8x128xf32>
    %256 = arith.mulf %240, %248 : vector<8x128xf32>
    %257 = arith.addf %255, %256 : vector<8x128xf32>
    %258 = math.tanh %257 : vector<8x128xf32>
    %259 = arith.mulf %254, %258 : vector<8x128xf32>
    %c8_i32 = arith.constant 8 : i32
    %260 = arith.truncf %259 : vector<8x128xf32> to vector<8x128xbf16>
    %c0_61 = arith.constant 0 : index
    %c0_62 = arith.constant 0 : index
    %261 = vector.load %arg5[%c0_61, %c0_62] : memref<128x128xbf16, #tpu.memory_space<vmem>>, vector<128x128xbf16>
    %cst_63 = arith.constant dense<0.000000e+00> : vector<8x128xf32>
    %262 = tpu.matmul %260, %261, %cst_63 {dimension_numbers = #tpu.dot_dimension_numbers<[1], [0], [0], [1], [0, 0, 1, 1], [], []>} : vector<8x128xbf16>, vector<128x128xbf16>, vector<8x128xf32> -> vector<8x128xf32>
    %c0_64 = arith.constant 0 : index
    %c0_65 = arith.constant 0 : index
    %263 = vector.load %arg6[%c0_64, %c0_65] : memref<1x128xf32, #tpu.memory_space<vmem>>, vector<1x128xf32>
    %264 = vector.broadcast %263 : vector<1x128xf32> to vector<8x128xf32>
    %265 = arith.addf %262, %264 : vector<8x128xf32>
    %266 = arith.negf %265 : vector<8x128xf32>
    %267 = math.exp %266 : vector<8x128xf32>
    %cst_66 = arith.constant 1.000000e+00 : f32
    %268 = vector.broadcast %cst_66 : f32 to vector<8x128xf32>
    %269 = arith.addf %268, %267 : vector<8x128xf32>
    %270 = arith.divf %268, %269 : vector<8x128xf32>
    %c0_67 = arith.constant 0 : index
    %c0_68 = arith.constant 0 : index
    %271 = vector.load %arg7[%c0_67, %c0_68] : memref<8x128xf32, #tpu.memory_space<vmem>>, vector<8x128xf32>
    tpu.vector_store %arg7[%c0_67, %c0_68], %270 {strides = array<i32>} : memref<8x128xf32, #tpu.memory_space<vmem>>, vector<8x128xf32>,
    return
  }
  func.func @transform_0(%arg0: i32) -> (i32, i32, i32) {
    %c0_i32 = arith.constant 0 : i32
    %c0_i32_0 = arith.constant 0 : i32
    %c0_i32_1 = arith.constant 0 : i32
    %c0_i32_2 = arith.constant 0 : i32
    return %c0_i32, %c0_i32_0, %c0_i32_1 : i32, i32, i32
  }
  func.func @transform_1(%arg0: i32) -> (i32, i32) {
    %c0_i32 = arith.constant 0 : i32
    %c0_i32_0 = arith.constant 0 : i32
    %c0_i32_1 = arith.constant 0 : i32
    return %c0_i32, %c0_i32_0 : i32, i32
  }
  func.func @transform_2(%arg0: i32) -> (i32, i32) {
    %c0_i32 = arith.constant 0 : i32
    %c0_i32_0 = arith.constant 0 : i32
    %c0_i32_1 = arith.constant 0 : i32
    return %c0_i32, %c0_i32_0 : i32, i32
  }
  func.func @transform_3(%arg0: i32) -> (i32, i32) {
    %c0_i32 = arith.constant 0 : i32
    %c0_i32_0 = arith.constant 0 : i32
    %c0_i32_1 = arith.constant 0 : i32
    return %c0_i32, %c0_i32_0 : i32, i32
  }
  func.func @transform_4(%arg0: i32) -> (i32, i32) {
    %c0_i32 = arith.constant 0 : i32
    %c0_i32_0 = arith.constant 0 : i32
    %c0_i32_1 = arith.constant 0 : i32
    return %c0_i32, %c0_i32_0 : i32, i32
  }
  func.func @transform_5(%arg0: i32) -> (i32, i32) {
    %c0_i32 = arith.constant 0 : i32
    %c0_i32_0 = arith.constant 0 : i32
    %c0_i32_1 = arith.constant 0 : i32
    return %c0_i32, %c0_i32_0 : i32, i32
  }
  func.func @transform_6(%arg0: i32) -> (i32, i32) {
    %c0_i32 = arith.constant 0 : i32
    %c0_i32_0 = arith.constant 0 : i32
    %c0_i32_1 = arith.constant 0 : i32
    return %c0_i32, %c0_i32_0 : i32, i32
  }
}

</mosaic_0001>

<bundles_post_ra>
// kernel: classifier_embed_forward.1
= control target key start
LH: loop header
LB: loop body
LE: loop exit
PB: predicated region body
PF: predicated region fallthrough
CT: control target
= control target key end

     0   :  { %vm4009_vm0 = vmmov 0   ;;  %s5402_s1 = inlined_call_operand.vmem [shape: bf16[768,512], index: 1, kind: input, shape index: {}]   ;;  %s5403_s0 = inlined_call_operand.vmem [shape: bf16[8,8,768], index: 0, kind: input, shape index: {}]   ;;  %s5404_s2 = inlined_call_operand.vmem [shape: bf16[128,512], index: 2, kind: input, shape index: {}]   ;;  %s5405_s3 = inlined_call_operand.vmem [shape: f32[1,512], index: 3, kind: input, shape index: {}]   ;;  %s5406_s4 = inlined_call_operand.vmem [shape: bf16[128,128], index: 4, kind: input, shape index: {}]   ;;  %s5407_s5 = inlined_call_operand.vmem [shape: f32[1,128], index: 5, kind: input, shape index: {}]   ;;  %s5408_s6 = inlined_call_operand.vmem [shape: f32[8,128], index: 6, kind: output, shape index: {}]  }
   0x1   :  { %v3463_v0 = vld [vmem:[%s5402_s1 + $0x4] ss:$16 sps:$4 sm:$0xff]   ;;  %v3465_v1 = vld [vmem:[%s5402_s1 + $0xc] ss:$16 sps:$4 sm:$0xff]   ;;  %v3467_v2 = vld [vmem:[%s5402_s1] ss:$16 sps:$4 sm:$0xff]  }
   0x2   :  { %1342 = vmatprep.subr.bf16.mxu0 %v3463_v0  ;;  %v3468_v3 = vld [vmem:[%s5402_s1 + $0x8] ss:$16 sps:$4 sm:$0xff]   ;;  %1561 = vmatprep.subr.bf16.mxu1 %v3465_v1  ;;  %v3469_v4 = vld [vmem:[%s5402_s1 + $0x24] ss:$16 sps:$4 sm:$0xff]   ;;  %v3471_v5 = vld [vmem:[%s5402_s1 + $0x2c] ss:$16 sps:$4 sm:$0xff]  }
   0x3   :  { %1343 = vmatpush1.bf16.msra.mxu0 %v3467_v2  ;;  %1562 = vmatpush1.bf16.msra.mxu1 %v3468_v3  ;;  %v3473_v6 = vld [vmem:[%s5402_s1 + $0x20] ss:$16 sps:$4 sm:$0xff]   ;;  %v3474_v7 = vld [vmem:[%s5402_s1 + $0x28] ss:$16 sps:$4 sm:$0xff]   ;;  %v3475_v8 = vld [vmem:[%s5402_s1 + $0x44] ss:$16 sps:$4 sm:$0xff]  }
   0x4   :  { %1344 = vmatprep.subr.bf16.mxu0 %v3469_v4  ;;  %1563 = vmatprep.subr.bf16.mxu1 %v3471_v5  ;;  %v3477_v9 = vld [vmem:[%s5402_s1 + $0x4c] ss:$16 sps:$4 sm:$0xff]   ;;  %v3479_v10 = vld [vmem:[%s5402_s1 + $0x40] ss:$16 sps:$4 sm:$0xff]   ;;  %v3480_v11 = vld [vmem:[%s5402_s1 + $0x48] ss:$16 sps:$4 sm:$0xff]  }
   0x5   :  { %v3481_v12 = vld [vmem:[%s5402_s1 + $0x64] ss:$16 sps:$4 sm:$0xff]   ;;  %v3483_v13 = vld [vmem:[%s5402_s1 + $0x6c] ss:$16 sps:$4 sm:$0xff]   ;;  %v3485_v14 = vld [vmem:[%s5402_s1 + $0x60] ss:$16 sps:$4 sm:$0xff]  }
   0x6   :  { %v3486_v15 = vld [vmem:[%s5402_s1 + $0x68] ss:$16 sps:$4 sm:$0xff]   ;;  %v3487_v16 = vld [vmem:[%s5402_s1 + $0x84] ss:$16 sps:$4 sm:$0xff]   ;;  %v3489_v17 = vld [vmem:[%s5402_s1 + $0x8c] ss:$16 sps:$4 sm:$0xff]  }
   0x7   :  { %1345 = vmatpush1.bf16.msra.mxu0 %v3473_v6  ;;  %1564 = vmatpush1.bf16.msra.mxu1 %v3474_v7  ;;  %v3491_v18 = vld [vmem:[%s5402_s1 + $0x80] ss:$16 sps:$4 sm:$0xff]   ;;  %v3492_v19 = vld [vmem:[%s5402_s1 + $0x88] ss:$16 sps:$4 sm:$0xff]   ;;  %v3493_v20 = vld [vmem:[%s5402_s1 + $0xa4] ss:$16 sps:$4 sm:$0xff]  }
   0x8   :  { %1346 = vmatprep.subr.bf16.mxu0 %v3475_v8  ;;  %1565 = vmatprep.subr.bf16.mxu1 %v3477_v9  ;;  %v3495_v21 = vld [vmem:[%s5402_s1 + $0xac] ss:$16 sps:$4 sm:$0xff]   ;;  %v3497_v22 = vld [vmem:[%s5402_s1 + $0xa0] ss:$16 sps:$4 sm:$0xff]   ;;  %v3498_v23 = vld [vmem:[%s5402_s1 + $0xa8] ss:$16 sps:$4 sm:$0xff]  }
   0x9   :  { %v3499_v24 = vld [vmem:[%s5402_s1 + $0xc4] ss:$16 sps:$4 sm:$0xff]   ;;  %v3501_v25 = vld [vmem:[%s5402_s1 + $0xcc] ss:$16 sps:$4 sm:$0xff]   ;;  %v3503_v26 = vld [vmem:[%s5402_s1 + $0xc0] ss:$16 sps:$4 sm:$0xff]  }
   0xa   :  { %v3504_v27 = vld [vmem:[%s5402_s1 + $0xc8] ss:$16 sps:$4 sm:$0xff]   ;;  %v3505_v28 = vld [vmem:[%s5402_s1 + $0xe4] ss:$16 sps:$4 sm:$0xff]   ;;  %v3507_v29 = vld [vmem:[%s5402_s1 + $0xec] ss:$16 sps:$4 sm:$0xff]  }
   0xb   :  { %1347 = vmatpush1.bf16.msra.mxu0 %v3479_v10  ;;  %1566 = vmatpush1.bf16.msra.mxu1 %v3480_v11  ;;  %v3509_v30 = vld [vmem:[%s5402_s1 + $0xe0] ss:$16 sps:$4 sm:$0xff]   ;;  %v3510_v31 = vld [vmem:[%s5402_s1 + $0xe8] ss:$16 sps:$4 sm:$0xff]   ;;  %v3511_v32 = vld [vmem:[%s5402_s1 + $0x104] ss:$16 sps:$4 sm:$0xff]  }
   0xc   :  { %1348 = vmatprep.subr.bf16.mxu0 %v3481_v12  ;;  %1567 = vmatprep.subr.bf16.mxu1 %v3483_v13  ;;  %v3513_v33 = vld [vmem:[%s5402_s1 + $0x10c] ss:$16 sps:$4 sm:$0xff]   ;;  %v3515_v34 = vld [vmem:[%s5402_s1 + $0x100] ss:$16 sps:$4 sm:$0xff]   ;;  %v3516_v35 = vld [vmem:[%s5402_s1 + $0x108] ss:$16 sps:$4 sm:$0xff]  }
   0xd   :  { %v3517_v36 = vld [vmem:[%s5402_s1 + $0x124] ss:$16 sps:$4 sm:$0xff]   ;;  %v3519_v37 = vld [vmem:[%s5402_s1 + $0x12c] ss:$16 sps:$4 sm:$0xff]   ;;  %v3521_v38 = vld [vmem:[%s5402_s1 + $0x120] ss:$16 sps:$4 sm:$0xff]  }
   0xe   :  { %v3522_v39 = vld [vmem:[%s5402_s1 + $0x128] ss:$16 sps:$4 sm:$0xff]   ;;  %v3523_v40 = vld [vmem:[%s5402_s1 + $0x144] ss:$16 sps:$4 sm:$0xff]   ;;  %v3525_v41 = vld [vmem:[%s5402_s1 + $0x14c] ss:$16 sps:$4 sm:$0xff]  }
   0xf   :  { %1349 = vmatpush1.bf16.msra.mxu0 %v3485_v14  ;;  %1568 = vmatpush1.bf16.msra.mxu1 %v3486_v15  ;;  %v3527_v42 = vld [vmem:[%s5402_s1 + $0x140] ss:$16 sps:$4 sm:$0xff]   ;;  %v3528_v43 = vld [vmem:[%s5402_s1 + $0x148] ss:$16 sps:$4 sm:$0xff]   ;;  %v3529_v44 = vld [vmem:[%s5402_s1 + $0x164] ss:$16 sps:$4 sm:$0xff]  }
  0x10   :  { %1350 = vmatprep.subr.bf16.mxu0 %v3487_v16  ;;  %1569 = vmatprep.subr.bf16.mxu1 %v3489_v17  ;;  %v3531_v45 = vld [vmem:[%s5402_s1 + $0x16c] ss:$16 sps:$4 sm:$0xff]   ;;  %v3533_v46 = vld [vmem:[%s5402_s1 + $0x160] ss:$16 sps:$4 sm:$0xff]   ;;  %v3534_v47 = vld [vmem:[%s5402_s1 + $0x168] ss:$16 sps:$4 sm:$0xff]  }
  0x11   :  { %v3561_v48 = vld [vmem:[%s5403_s0 + $0x4] ss:$24 sps:$4 sm:$0xff]   ;;  %v3539_v51 = vld [vmem:[%s5402_s1 + $0x180] ss:$16 sps:$4 sm:$0xff]   ;;  %v3540_v52 = vld [vmem:[%s5402_s1 + $0x188] ss:$16 sps:$4 sm:$0xff]  }
  0x12   :  { %v3535_v49 = vld [vmem:[%s5402_s1 + $0x184] ss:$16 sps:$4 sm:$0xff]   ;;  %v3537_v50 = vld [vmem:[%s5402_s1 + $0x18c] ss:$16 sps:$4 sm:$0xff]   ;;  %1374 = vmatprep.mubr.bf16.mxu0 %v3561_v48  ;;  %1593 = vmatprep.mubr.bf16.mxu1 %v3561_v48  ;;  %v3545_v55 = vld [vmem:[%s5402_s1 + $0x1a0] ss:$16 sps:$4 sm:$0xff]  }
  0x13   :  { %1351 = vmatpush1.bf16.msra.mxu0 %v3491_v18  ;;  %1570 = vmatpush1.bf16.msra.mxu1 %v3492_v19  ;;  %v3541_v53 = vld [vmem:[%s5402_s1 + $0x1a4] ss:$16 sps:$4 sm:$0xff]   ;;  %v3543_v54 = vld [vmem:[%s5402_s1 + $0x1ac] ss:$16 sps:$4 sm:$0xff]   ;;  %v3546_v56 = vld [vmem:[%s5402_s1 + $0x1a8] ss:$16 sps:$4 sm:$0xff]  }
  0x14   :  { %1352 = vmatprep.subr.bf16.mxu0 %v3493_v20  ;;  %1571 = vmatprep.subr.bf16.mxu1 %v3495_v21  ;;  %v3547_v57 = vld [vmem:[%s5402_s1 + $0x1c4] ss:$16 sps:$4 sm:$0xff]   ;;  %v3549_v58 = vld [vmem:[%s5402_s1 + $0x1cc] ss:$16 sps:$4 sm:$0xff]   ;;  %v3551_v59 = vld [vmem:[%s5402_s1 + $0x1c0] ss:$16 sps:$4 sm:$0xff]  }
  0x15   :  { %v3552_v60 = vld [vmem:[%s5402_s1 + $0x1c8] ss:$16 sps:$4 sm:$0xff]   ;;  %v3553_v61 = vld [vmem:[%s5402_s1 + $0x1e4] ss:$16 sps:$4 sm:$0xff]   ;;  %v3555_v62 = vld [vmem:[%s5402_s1 + $0x1ec] ss:$16 sps:$4 sm:$0xff]  }
  0x16   :  { %v3557_v63 = vld [vmem:[%s5402_s1 + $0x1e0] ss:$16 sps:$4 sm:$0xff]   ;;  %v3558_v0 = vld [vmem:[%s5402_s1 + $0x1e8] ss:$16 sps:$4 sm:$0xff]   ;;  %v3564_v1 = vld [vmem:[%s5402_s1 + $0x204] ss:$16 sps:$4 sm:$0xff]  }
  0x17   :  { %1353 = vmatpush1.bf16.msra.mxu0 %v3497_v22  ;;  %1572 = vmatpush1.bf16.msra.mxu1 %v3498_v23  ;;  %v3567_v2 = vld [vmem:[%s5402_s1 + $0x20c] ss:$16 sps:$4 sm:$0xff]   ;;  %v3559_v3 = vld [vmem:[%s5403_s0] ss:$24 sps:$4 sm:$0xff]   ;;  %v3570_v6 = vld [vmem:[%s5402_s1 + $0x224] ss:$16 sps:$4 sm:$0xff]  }
  0x18   :  { %1354 = vmatprep.subr.bf16.mxu0 %v3499_v24  ;;  %1573 = vmatprep.subr.bf16.mxu1 %v3501_v25  ;;  %v3562_v4 = vld [vmem:[%s5402_s1 + $0x200] ss:$16 sps:$4 sm:$0xff]   ;;  %v3565_v5 = vld [vmem:[%s5402_s1 + $0x208] ss:$16 sps:$4 sm:$0xff]   ;;  %v3573_v7 = vld [vmem:[%s5402_s1 + $0x22c] ss:$16 sps:$4 sm:$0xff]  }
  0x19   :  { %v3568_v8 = vld [vmem:[%s5402_s1 + $0x220] ss:$16 sps:$4 sm:$0xff]   ;;  %v3571_v9 = vld [vmem:[%s5402_s1 + $0x228] ss:$16 sps:$4 sm:$0xff]   ;;  %v3576_v10 = vld [vmem:[%s5402_s1 + $0x244] ss:$16 sps:$4 sm:$0xff]  }
  0x1a   :  { %v3579_v11 = vld [vmem:[%s5402_s1 + $0x24c] ss:$16 sps:$4 sm:$0xff]   ;;  %v3574_v12 = vld [vmem:[%s5402_s1 + $0x240] ss:$16 sps:$4 sm:$0xff]   ;;  %v3577_v14 = vld [vmem:[%s5402_s1 + $0x248] ss:$16 sps:$4 sm:$0xff]  }
  0x1b   :  { %1355 = vmatpush1.bf16.msra.mxu0 %v3503_v26  ;;  %1574 = vmatpush1.bf16.msra.mxu1 %v3504_v27  ;;  %v3622_v13 = vld [vmem:[%s5403_s0 + $0x34] ss:$24 sps:$4 sm:$0xff]   ;;  %v3630_v17 = vld [vmem:[%s5403_s0 + $0x30] ss:$24 sps:$4 sm:$0xff]   ;;  %v3637_v22 = vld [vmem:[%s5403_s0 + $0x64] ss:$24 sps:$4 sm:$0xff]  }
  0x1c   :  { %1356 = vmatprep.subr.bf16.mxu0 %v3505_v28  ;;  %1575 = vmatprep.subr.bf16.mxu1 %v3507_v29  ;;  %v3582_v15 = vld [vmem:[%s5402_s1 + $0x264] ss:$16 sps:$4 sm:$0xff]   ;;  %v3585_v16 = vld [vmem:[%s5402_s1 + $0x26c] ss:$16 sps:$4 sm:$0xff]   ;;  %v3580_v18 = vld [vmem:[%s5402_s1 + $0x260] ss:$16 sps:$4 sm:$0xff]  }
  0x1d   :  { %v3583_v19 = vld [vmem:[%s5402_s1 + $0x268] ss:$16 sps:$4 sm:$0xff]   ;;  %v3588_v20 = vld [vmem:[%s5402_s1 + $0x284] ss:$16 sps:$4 sm:$0xff]   ;;  %v3591_v21 = vld [vmem:[%s5402_s1 + $0x28c] ss:$16 sps:$4 sm:$0xff]  }
  0x1e   :  { %v3586_v23 = vld [vmem:[%s5402_s1 + $0x280] ss:$16 sps:$4 sm:$0xff]   ;;  %v3589_v24 = vld [vmem:[%s5402_s1 + $0x288] ss:$16 sps:$4 sm:$0xff]   ;;  %v3594_v25 = vld [vmem:[%s5402_s1 + $0x2a4] ss:$16 sps:$4 sm:$0xff]  }
  0x1f   :  { %1357 = vmatpush1.bf16.msra.mxu0 %v3509_v30  ;;  %1576 = vmatpush1.bf16.msra.mxu1 %v3510_v31  ;;  %v3597_v26 = vld [vmem:[%s5402_s1 + $0x2ac] ss:$16 sps:$4 sm:$0xff]   ;;  %v3592_v27 = vld [vmem:[%s5402_s1 + $0x2a0] ss:$16 sps:$4 sm:$0xff]   ;;  %v3595_v29 = vld [vmem:[%s5402_s1 + $0x2a8] ss:$16 sps:$4 sm:$0xff]  }
  0x20   :  { %1358 = vmatprep.subr.bf16.mxu0 %v3511_v32  ;;  %1577 = vmatprep.subr.bf16.mxu1 %v3513_v33  ;;  %v3645_v28 = vld [vmem:[%s5403_s0 + $0x60] ss:$24 sps:$4 sm:$0xff]   ;;  %v3600_v30 = vld [vmem:[%s5402_s1 + $0x2c4] ss:$16 sps:$4 sm:$0xff]   ;;  %v3603_v32 = vld [vmem:[%s5402_s1 + $0x2cc] ss:$16 sps:$4 sm:$0xff]  }
  0x21   :  { %v3652_v31 = vld [vmem:[%s5403_s0 + $0x94] ss:$24 sps:$4 sm:$0xff]   ;;  %v3598_v33 = vld [vmem:[%s5402_s1 + $0x2c0] ss:$16 sps:$4 sm:$0xff]   ;;  %v3619_v48 = vld [vmem:[%s5402_s1 + $0x328] ss:$16 sps:$4 sm:$0xff]  }
  0x23   :  { %1359 = vmatpush1.bf16.msra.mxu0 %v3515_v34  ;;  %1578 = vmatpush1.bf16.msra.mxu1 %v3516_v35  ;;  %v3601_v34 = vld [vmem:[%s5402_s1 + $0x2c8] ss:$16 sps:$4 sm:$0xff]   ;;  %v3606_v35 = vld [vmem:[%s5402_s1 + $0x2e4] ss:$16 sps:$4 sm:$0xff]  }
  0x24   :  { %1360 = vmatprep.subr.bf16.mxu0 %v3517_v36  ;;  %1579 = vmatprep.subr.bf16.mxu1 %v3519_v37  ;;  %v3609_v36 = vld [vmem:[%s5402_s1 + $0x2ec] ss:$16 sps:$4 sm:$0xff]   ;;  %v3604_v37 = vld [vmem:[%s5402_s1 + $0x2e0] ss:$16 sps:$4 sm:$0xff]  }
  0x27   :  { %1361 = vmatpush1.bf16.msra.mxu0 %v3521_v38  ;;  %1580 = vmatpush1.bf16.msra.mxu1 %v3522_v39  ;;  %v3660_v38 = vld [vmem:[%s5403_s0 + $0x90] ss:$24 sps:$4 sm:$0xff]  }
  0x28   :  { %1362 = vmatprep.subr.bf16.mxu0 %v3523_v40  ;;  %1581 = vmatprep.subr.bf16.mxu1 %v3525_v41  ;;  %v3607_v39 = vld [vmem:[%s5402_s1 + $0x2e8] ss:$16 sps:$4 sm:$0xff]   ;;  %v3669_v40 = vld [vmem:[%s5403_s0 + $0xc] ss:$24 sps:$4 sm:$0xff]  }
  0x29   :  { %v3612_v41 = vld [vmem:[%s5402_s1 + $0x304] ss:$16 sps:$4 sm:$0xff]  }
  0x2b   :  { %1363 = vmatpush1.bf16.msra.mxu0 %v3527_v42  ;;  %1582 = vmatpush1.bf16.msra.mxu1 %v3528_v43  ;;  %v3615_v42 = vld [vmem:[%s5402_s1 + $0x30c] ss:$16 sps:$4 sm:$0xff]   ;;  %v3610_v43 = vld [vmem:[%s5402_s1 + $0x300] ss:$16 sps:$4 sm:$0xff]  }
  0x2c   :  { %1364 = vmatprep.subr.bf16.mxu0 %v3529_v44  ;;  %1583 = vmatprep.subr.bf16.mxu1 %v3531_v45  ;;  %v3613_v44 = vld [vmem:[%s5402_s1 + $0x308] ss:$16 sps:$4 sm:$0xff]   ;;  %v3618_v45 = vld [vmem:[%s5402_s1 + $0x324] ss:$16 sps:$4 sm:$0xff]  }
  0x2f   :  { %1365 = vmatpush1.bf16.msra.mxu0 %v3533_v46  ;;  %1584 = vmatpush1.bf16.msra.mxu1 %v3534_v47  ;;  %v3621_v46 = vld [vmem:[%s5402_s1 + $0x32c] ss:$16 sps:$4 sm:$0xff]   ;;  %v3616_v47 = vld [vmem:[%s5402_s1 + $0x320] ss:$16 sps:$4 sm:$0xff]  }
  0x30   :  { %1366 = vmatprep.subr.bf16.mxu0 %v3535_v49  ;;  %1585 = vmatprep.subr.bf16.mxu1 %v3537_v50  ;;  %v3626_v49 = vld [vmem:[%s5402_s1 + $0x344] ss:$16 sps:$4 sm:$0xff]   ;;  %v3629_v50 = vld [vmem:[%s5402_s1 + $0x34c] ss:$16 sps:$4 sm:$0xff]  }
  0x33   :  { %1367 = vmatpush1.bf16.msra.mxu0 %v3539_v51  ;;  %1586 = vmatpush1.bf16.msra.mxu1 %v3540_v52  ;;  %v3624_v51 = vld [vmem:[%s5402_s1 + $0x340] ss:$16 sps:$4 sm:$0xff]   ;;  %v3627_v52 = vld [vmem:[%s5402_s1 + $0x348] ss:$16 sps:$4 sm:$0xff]  }
  0x34   :  { %1368 = vmatprep.subr.bf16.mxu0 %v3541_v53  ;;  %1587 = vmatprep.subr.bf16.mxu1 %v3543_v54  ;;  %v3633_v53 = vld [vmem:[%s5402_s1 + $0x364] ss:$16 sps:$4 sm:$0xff]   ;;  %v3636_v54 = vld [vmem:[%s5402_s1 + $0x36c] ss:$16 sps:$4 sm:$0xff]  }
  0x37   :  { %1369 = vmatpush1.bf16.msra.mxu0 %v3545_v55  ;;  %1588 = vmatpush1.bf16.msra.mxu1 %v3546_v56  ;;  %v3631_v55 = vld [vmem:[%s5402_s1 + $0x360] ss:$16 sps:$4 sm:$0xff]   ;;  %v3634_v56 = vld [vmem:[%s5402_s1 + $0x368] ss:$16 sps:$4 sm:$0xff]  }
  0x38   :  { %1370 = vmatprep.subr.bf16.mxu0 %v3547_v57  ;;  %1589 = vmatprep.subr.bf16.mxu1 %v3549_v58  ;;  %v3641_v57 = vld [vmem:[%s5402_s1 + $0x384] ss:$16 sps:$4 sm:$0xff]   ;;  %v3644_v58 = vld [vmem:[%s5402_s1 + $0x38c] ss:$16 sps:$4 sm:$0xff]  }
  0x3b   :  { %1371 = vmatpush1.bf16.msra.mxu0 %v3551_v59  ;;  %1590 = vmatpush1.bf16.msra.mxu1 %v3552_v60  ;;  %v3639_v59 = vld [vmem:[%s5402_s1 + $0x380] ss:$16 sps:$4 sm:$0xff]   ;;  %v3642_v60 = vld [vmem:[%s5402_s1 + $0x388] ss:$16 sps:$4 sm:$0xff]  }
  0x3c   :  { %1372 = vmatprep.subr.bf16.mxu0 %v3553_v61  ;;  %1591 = vmatprep.subr.bf16.mxu1 %v3555_v62  ;;  %v3648_v61 = vld [vmem:[%s5402_s1 + $0x3a4] ss:$16 sps:$4 sm:$0xff]   ;;  %v3651_v62 = vld [vmem:[%s5402_s1 + $0x3ac] ss:$16 sps:$4 sm:$0xff]  }
  0x3f   :  { %1373 = vmatpush1.bf16.msra.mxu0 %v3557_v63  ;;  %1592 = vmatpush1.bf16.msra.mxu1 %v3558_v0  ;;  %v3646_v63 = vld [vmem:[%s5402_s1 + $0x3a0] ss:$16 sps:$4 sm:$0xff]   ;;  %v3649_v0 = vld [vmem:[%s5402_s1 + $0x3a8] ss:$16 sps:$4 sm:$0xff]  }
  0x40   :  { %1415 = vmatprep.subr.bf16.mxu0 %v3564_v1  ;;  %1634 = vmatprep.subr.bf16.mxu1 %v3567_v2  ;;  %v3656_v1 = vld [vmem:[%s5402_s1 + $0x3c4] ss:$16 sps:$4 sm:$0xff]   ;;  %v3659_v2 = vld [vmem:[%s5402_s1 + $0x3cc] ss:$16 sps:$4 sm:$0xff]  }
  0x42   :  { %1375 = vmatmul.mubr.bf16.vlgmr.msra.gmra.mrb[0].mxu0 %v3559_v3  ;;  %1594 = vmatmul.mubr.bf16.vlgmr.msra.gmra.mrb[0].mxu1 %v3559_v3  ;;  %v3654_v3 = vld [vmem:[%s5402_s1 + $0x3c0] ss:$16 sps:$4 sm:$0xff]  }
  0x43   :  { %1416 = vmatpush1.bf16.msra.mxu0 %v3562_v4  ;;  %1635 = vmatpush1.bf16.msra.mxu1 %v3565_v5  ;;  %v3657_v4 = vld [vmem:[%s5402_s1 + $0x3c8] ss:$16 sps:$4 sm:$0xff]   ;;  %v3663_v5 = vld [vmem:[%s5402_s1 + $0x3e4] ss:$16 sps:$4 sm:$0xff]  }
  0x44   :  { %1417 = vmatprep.subr.bf16.mxu0 %v3570_v6  ;;  %1636 = vmatprep.subr.bf16.mxu1 %v3573_v7  ;;  %v3666_v6 = vld [vmem:[%s5402_s1 + $0x3ec] ss:$16 sps:$4 sm:$0xff]   ;;  %v3661_v7 = vld [vmem:[%s5402_s1 + $0x3e0] ss:$16 sps:$4 sm:$0xff]  }
  0x45   :  { %1384 = vmatprep.mubr.bf16.mxu0 %v3622_v13  ;;  %1603 = vmatprep.mubr.bf16.mxu1 %v3622_v13  ;;  %v3673_v13 = vld [vmem:[%s5402_s1 + $0x408] ss:$16 sps:$4 sm:$0xff]  }
  0x47   :  { %1418 = vmatpush1.bf16.msra.mxu0 %v3568_v8  ;;  %1637 = vmatpush1.bf16.msra.mxu1 %v3571_v9  ;;  %v3664_v8 = vld [vmem:[%s5402_s1 + $0x3e8] ss:$16 sps:$4 sm:$0xff]   ;;  %v3672_v9 = vld [vmem:[%s5402_s1 + $0x404] ss:$16 sps:$4 sm:$0xff]  }
  0x48   :  { %1419 = vmatprep.subr.bf16.mxu0 %v3576_v10  ;;  %1638 = vmatprep.subr.bf16.mxu1 %v3579_v11  ;;  %v3675_v10 = vld [vmem:[%s5402_s1 + $0x40c] ss:$16 sps:$4 sm:$0xff]   ;;  %v3667_v11 = vld [vmem:[%s5403_s0 + $0x8] ss:$24 sps:$4 sm:$0xff]  }
  0x4a   :  { %1385 = vmatmul.mubr.bf16.gmra.mrb[4].mxu0 %v3630_v17  ;;  %1604 = vmatmul.mubr.bf16.gmra.mrb[4].mxu1 %v3630_v17  ;;  %v3676_v17 = vld [vmem:[%s5402_s1 + $0x420] ss:$16 sps:$4 sm:$0xff]  }
  0x4b   :  { %1420 = vmatpush1.bf16.msra.mxu0 %v3574_v12  ;;  %1639 = vmatpush1.bf16.msra.mxu1 %v3577_v14  ;;  %v3670_v12 = vld [vmem:[%s5402_s1 + $0x400] ss:$16 sps:$4 sm:$0xff]   ;;  %v3678_v14 = vld [vmem:[%s5402_s1 + $0x424] ss:$16 sps:$4 sm:$0xff]  }
  0x4c   :  { %1421 = vmatprep.subr.bf16.mxu0 %v3582_v15  ;;  %1640 = vmatprep.subr.bf16.mxu1 %v3585_v16  ;;  %v3681_v15 = vld [vmem:[%s5402_s1 + $0x42c] ss:$16 sps:$4 sm:$0xff]  }
  0x4d   :  { %1394 = vmatprep.mubr.bf16.mxu0 %v3637_v22  ;;  %1613 = vmatprep.mubr.bf16.mxu1 %v3637_v22  ;;  %v3730_v16 = vld [vmem:[%s5403_s0 + $0x3c] ss:$24 sps:$4 sm:$0xff]   ;;  %v3685_v22 = vld [vmem:[%s5402_s1 + $0x448] ss:$16 sps:$4 sm:$0xff]  }
  0x4f   :  { %1422 = vmatpush1.bf16.msra.mxu0 %v3580_v18  ;;  %1641 = vmatpush1.bf16.msra.mxu1 %v3583_v19  ;;  %v3679_v18 = vld [vmem:[%s5402_s1 + $0x428] ss:$16 sps:$4 sm:$0xff]   ;;  %v3684_v19 = vld [vmem:[%s5402_s1 + $0x444] ss:$16 sps:$4 sm:$0xff]  }
  0x50   :  { %1423 = vmatprep.subr.bf16.mxu0 %v3588_v20  ;;  %1642 = vmatprep.subr.bf16.mxu1 %v3591_v21  ;;  %v3687_v20 = vld [vmem:[%s5402_s1 + $0x44c] ss:$16 sps:$4 sm:$0xff]   ;;  %v3682_v21 = vld [vmem:[%s5402_s1 + $0x440] ss:$16 sps:$4 sm:$0xff]  }
  0x52   :  { %1395 = vmatmul.mubr.bf16.gmra.mrb[8].mxu0 %v3645_v28  ;;  %1614 = vmatmul.mubr.bf16.gmra.mrb[8].mxu1 %v3645_v28  ;;  %v3691_v28 = vld [vmem:[%s5402_s1 + $0x468] ss:$16 sps:$4 sm:$0xff]  }
  0x53   :  { %1424 = vmatpush1.bf16.msra.mxu0 %v3586_v23  ;;  %1643 = vmatpush1.bf16.msra.mxu1 %v3589_v24  ;;  %v3732_v23 = vld [vmem:[%s5403_s0 + $0x38] ss:$24 sps:$4 sm:$0xff]   ;;  %v3690_v24 = vld [vmem:[%s5402_s1 + $0x464] ss:$16 sps:$4 sm:$0xff]  }
  0x54   :  { %1425 = vmatprep.subr.bf16.mxu0 %v3594_v25  ;;  %1644 = vmatprep.subr.bf16.mxu1 %v3597_v26  ;;  %v3693_v25 = vld [vmem:[%s5402_s1 + $0x46c] ss:$16 sps:$4 sm:$0xff]  }
  0x55   :  { %1404 = vmatprep.mubr.bf16.mxu0 %v3652_v31  ;;  %1623 = vmatprep.mubr.bf16.mxu1 %v3652_v31  ;;  %v3745_v26 = vld [vmem:[%s5403_s0 + $0x6c] ss:$24 sps:$4 sm:$0xff]   ;;  %v3694_v31 = vld [vmem:[%s5402_s1 + $0x480] ss:$16 sps:$4 sm:$0xff]  }
  0x57   :  { %1426 = vmatpush1.bf16.msra.mxu0 %v3592_v27  ;;  %1645 = vmatpush1.bf16.msra.mxu1 %v3595_v29  ;;  %v3688_v27 = vld [vmem:[%s5402_s1 + $0x460] ss:$16 sps:$4 sm:$0xff]   ;;  %v3696_v29 = vld [vmem:[%s5402_s1 + $0x484] ss:$16 sps:$4 sm:$0xff]  }
  0x58   :  { %1427 = vmatprep.subr.bf16.mxu0 %v3600_v30  ;;  %1646 = vmatprep.subr.bf16.mxu1 %v3603_v32  ;;  %v3699_v30 = vld [vmem:[%s5402_s1 + $0x48c] ss:$16 sps:$4 sm:$0xff]   ;;  %v3747_v32 = vld [vmem:[%s5403_s0 + $0x68] ss:$24 sps:$4 sm:$0xff]  }
  0x5a   :  { %1405 = vmatmul.mubr.bf16.gmra.mrb[12].mxu0 %v3660_v38  ;;  %1624 = vmatmul.mubr.bf16.gmra.mrb[12].mxu1 %v3660_v38  ;;  %v3703_v38 = vld [vmem:[%s5402_s1 + $0x4a8] ss:$16 sps:$4 sm:$0xff]  }
  0x5b   :  { %1428 = vmatpush1.bf16.msra.mxu0 %v3598_v33  ;;  %1647 = vmatpush1.bf16.msra.mxu1 %v3601_v34  ;;  %v3697_v33 = vld [vmem:[%s5402_s1 + $0x488] ss:$16 sps:$4 sm:$0xff]   ;;  %v3702_v34 = vld [vmem:[%s5402_s1 + $0x4a4] ss:$16 sps:$4 sm:$0xff]  }
  0x5c   :  { %1429 = vmatprep.subr.bf16.mxu0 %v3606_v35  ;;  %1648 = vmatprep.subr.bf16.mxu1 %v3609_v36  ;;  %v3705_v35 = vld [vmem:[%s5402_s1 + $0x4ac] ss:$16 sps:$4 sm:$0xff]  }
  0x5d   :  { %1447 = vmatprep.mubr.bf16.mxu0 %v3669_v40  ;;  %1666 = vmatprep.mubr.bf16.mxu1 %v3669_v40  ;;  %v3760_v36 = vld [vmem:[%s5403_s0 + $0x9c] ss:$24 sps:$4 sm:$0xff]  }
  0x5e   :  { %v3711_v40 = vld [vmem:[%s5402_s1 + $0x4cc] ss:$16 sps:$4 sm:$0xff]  }
  0x5f   :  { %1430 = vmatpush1.bf16.msra.mxu0 %v3604_v37  ;;  %1649 = vmatpush1.bf16.msra.mxu1 %v3607_v39  ;;  %v3700_v37 = vld [vmem:[%s5402_s1 + $0x4a0] ss:$16 sps:$4 sm:$0xff]   ;;  %v3708_v39 = vld [vmem:[%s5402_s1 + $0x4c4] ss:$16 sps:$4 sm:$0xff]  }
  0x60   :  { %1431 = vmatprep.subr.bf16.mxu0 %v3612_v41  ;;  %1650 = vmatprep.subr.bf16.mxu1 %v3615_v42  ;;  %v3706_v41 = vld [vmem:[%s5402_s1 + $0x4c0] ss:$16 sps:$4 sm:$0xff]   ;;  %v3709_v42 = vld [vmem:[%s5402_s1 + $0x4c8] ss:$16 sps:$4 sm:$0xff]  }
  0x63   :  { %1432 = vmatpush1.bf16.msra.mxu0 %v3610_v43  ;;  %1651 = vmatpush1.bf16.msra.mxu1 %v3613_v44  ;;  %v3762_v43 = vld [vmem:[%s5403_s0 + $0x98] ss:$24 sps:$4 sm:$0xff]   ;;  %v3714_v44 = vld [vmem:[%s5402_s1 + $0x4e4] ss:$16 sps:$4 sm:$0xff]  }
  0x64   :  { %1433 = vmatprep.subr.bf16.mxu0 %v3618_v45  ;;  %1652 = vmatprep.subr.bf16.mxu1 %v3621_v46  ;;  %v3717_v45 = vld [vmem:[%s5402_s1 + $0x4ec] ss:$16 sps:$4 sm:$0xff]  }
  0x65   :  { %v3777_v46 = vld [vmem:[%s5403_s0 + $0x14] ss:$24 sps:$4 sm:$0xff]  }
  0x67   :  { %1434 = vmatpush1.bf16.msra.mxu0 %v3616_v47  ;;  %1653 = vmatpush1.bf16.msra.mxu1 %v3619_v48  ;;  %v3712_v47 = vld [vmem:[%s5402_s1 + $0x4e0] ss:$16 sps:$4 sm:$0xff]   ;;  %v3715_v48 = vld [vmem:[%s5402_s1 + $0x4e8] ss:$16 sps:$4 sm:$0xff]  }
  0x68   :  { %1435 = vmatprep.subr.bf16.mxu0 %v3626_v49  ;;  %1654 = vmatprep.subr.bf16.mxu1 %v3629_v50  ;;  %v3720_v49 = vld [vmem:[%s5402_s1 + $0x504] ss:$16 sps:$4 sm:$0xff]   ;;  %v3723_v50 = vld [vmem:[%s5402_s1 + $0x50c] ss:$16 sps:$4 sm:$0xff]  }
  0x6b   :  { %1436 = vmatpush1.bf16.msra.mxu0 %v3624_v51  ;;  %1655 = vmatpush1.bf16.msra.mxu1 %v3627_v52  ;;  %v3718_v51 = vld [vmem:[%s5402_s1 + $0x500] ss:$16 sps:$4 sm:$0xff]   ;;  %v3721_v52 = vld [vmem:[%s5402_s1 + $0x508] ss:$16 sps:$4 sm:$0xff]  }
  0x6c   :  { %1437 = vmatprep.subr.bf16.mxu0 %v3633_v53  ;;  %1656 = vmatprep.subr.bf16.mxu1 %v3636_v54  ;;  %v3726_v53 = vld [vmem:[%s5402_s1 + $0x524] ss:$16 sps:$4 sm:$0xff]   ;;  %v3729_v54 = vld [vmem:[%s5402_s1 + $0x52c] ss:$16 sps:$4 sm:$0xff]  }
  0x6f   :  { %1438 = vmatpush1.bf16.msra.mxu0 %v3631_v55  ;;  %1657 = vmatpush1.bf16.msra.mxu1 %v3634_v56  ;;  %v3724_v55 = vld [vmem:[%s5402_s1 + $0x520] ss:$16 sps:$4 sm:$0xff]   ;;  %v3727_v56 = vld [vmem:[%s5402_s1 + $0x528] ss:$16 sps:$4 sm:$0xff]  }
  0x70   :  { %1439 = vmatprep.subr.bf16.mxu0 %v3641_v57  ;;  %1658 = vmatprep.subr.bf16.mxu1 %v3644_v58  ;;  %v3735_v57 = vld [vmem:[%s5402_s1 + $0x544] ss:$16 sps:$4 sm:$0xff]   ;;  %v3738_v58 = vld [vmem:[%s5402_s1 + $0x54c] ss:$16 sps:$4 sm:$0xff]  }
  0x73   :  { %1440 = vmatpush1.bf16.msra.mxu0 %v3639_v59  ;;  %1659 = vmatpush1.bf16.msra.mxu1 %v3642_v60  ;;  %v3733_v59 = vld [vmem:[%s5402_s1 + $0x540] ss:$16 sps:$4 sm:$0xff]   ;;  %v3736_v60 = vld [vmem:[%s5402_s1 + $0x548] ss:$16 sps:$4 sm:$0xff]  }
  0x74   :  { %1441 = vmatprep.subr.bf16.mxu0 %v3648_v61  ;;  %1660 = vmatprep.subr.bf16.mxu1 %v3651_v62  ;;  %v3741_v61 = vld [vmem:[%s5402_s1 + $0x564] ss:$16 sps:$4 sm:$0xff]   ;;  %v3744_v62 = vld [vmem:[%s5402_s1 + $0x56c] ss:$16 sps:$4 sm:$0xff]  }
  0x77   :  { %1442 = vmatpush1.bf16.msra.mxu0 %v3646_v63  ;;  %1661 = vmatpush1.bf16.msra.mxu1 %v3649_v0  ;;  %v3739_v63 = vld [vmem:[%s5402_s1 + $0x560] ss:$16 sps:$4 sm:$0xff]   ;;  %v3742_v0 = vld [vmem:[%s5402_s1 + $0x568] ss:$16 sps:$4 sm:$0xff]  }
  0x78   :  { %1443 = vmatprep.subr.bf16.mxu0 %v3656_v1  ;;  %1662 = vmatprep.subr.bf16.mxu1 %v3659_v2  ;;  %v3750_v1 = vld [vmem:[%s5402_s1 + $0x584] ss:$16 sps:$4 sm:$0xff]   ;;  %v3753_v2 = vld [vmem:[%s5402_s1 + $0x58c] ss:$16 sps:$4 sm:$0xff]  }
  0x7b   :  { %1444 = vmatpush1.bf16.msra.mxu0 %v3654_v3  ;;  %1663 = vmatpush1.bf16.msra.mxu1 %v3657_v4  ;;  %v3748_v3 = vld [vmem:[%s5402_s1 + $0x580] ss:$16 sps:$4 sm:$0xff]   ;;  %v3751_v4 = vld [vmem:[%s5402_s1 + $0x588] ss:$16 sps:$4 sm:$0xff]  }
  0x7c   :  { %1445 = vmatprep.subr.bf16.mxu0 %v3663_v5  ;;  %1664 = vmatprep.subr.bf16.mxu1 %v3666_v6  ;;  %v3756_v5 = vld [vmem:[%s5402_s1 + $0x5a4] ss:$16 sps:$4 sm:$0xff]   ;;  %v3759_v6 = vld [vmem:[%s5402_s1 + $0x5ac] ss:$16 sps:$4 sm:$0xff]  }
  0x7f   :  { %1446 = vmatpush1.bf16.msra.mxu0 %v3661_v7  ;;  %1665 = vmatpush1.bf16.msra.mxu1 %v3664_v8  ;;  %v3754_v7 = vld [vmem:[%s5402_s1 + $0x5a0] ss:$16 sps:$4 sm:$0xff]   ;;  %v3757_v8 = vld [vmem:[%s5402_s1 + $0x5a8] ss:$16 sps:$4 sm:$0xff]  }
  0x80   :  { %1488 = vmatprep.subr.bf16.mxu0 %v3672_v9  ;;  %1707 = vmatprep.subr.bf16.mxu1 %v3675_v10  ;;  %v3765_v9 = vld [vmem:[%s5402_s1 + $0x5c4] ss:$16 sps:$4 sm:$0xff]   ;;  %v3768_v10 = vld [vmem:[%s5402_s1 + $0x5cc] ss:$16 sps:$4 sm:$0xff]  }
  0x82   :  { %1448 = vmatmul.mubr.bf16.vlgmr.msra.gmra.mrb[0].mxu0 %v3667_v11  ;;  %1667 = vmatmul.mubr.bf16.vlgmr.msra.gmra.mrb[0].mxu1 %v3667_v11  ;;  %v3763_v11 = vld [vmem:[%s5402_s1 + $0x5c0] ss:$16 sps:$4 sm:$0xff]  }
  0x83   :  { %1489 = vmatpush1.bf16.msra.mxu0 %v3670_v12  ;;  %1708 = vmatpush1.bf16.msra.mxu1 %v3673_v13  ;;  %v3766_v12 = vld [vmem:[%s5402_s1 + $0x5c8] ss:$16 sps:$4 sm:$0xff]   ;;  %v3771_v13 = vld [vmem:[%s5402_s1 + $0x5e4] ss:$16 sps:$4 sm:$0xff]  }
  0x84   :  { %1490 = vmatprep.subr.bf16.mxu0 %v3678_v14  ;;  %1709 = vmatprep.subr.bf16.mxu1 %v3681_v15  ;;  %v3774_v14 = vld [vmem:[%s5402_s1 + $0x5ec] ss:$16 sps:$4 sm:$0xff]   ;;  %v3769_v15 = vld [vmem:[%s5402_s1 + $0x5e0] ss:$16 sps:$4 sm:$0xff]  }
  0x85   :  { %1457 = vmatprep.mubr.bf16.mxu0 %v3730_v16  ;;  %1676 = vmatprep.mubr.bf16.mxu1 %v3730_v16  ;;  %v3772_v16 = vld [vmem:[%s5402_s1 + $0x5e8] ss:$16 sps:$4 sm:$0xff]  }
  0x87   :  { %1491 = vmatpush1.bf16.msra.mxu0 %v3676_v17  ;;  %1710 = vmatpush1.bf16.msra.mxu1 %v3679_v18  ;;  %v4675_v17 = vld [vmem:[%s5404_s2 + $0x4] ss:$16 sps:$4 sm:$0xff]   ;;  %v4680_v18 = vld [vmem:[%s5404_s2 + $0xc] ss:$16 sps:$4 sm:$0xff]  }
  0x88   :  { %1492 = vmatprep.subr.bf16.mxu0 %v3684_v19  ;;  %1711 = vmatprep.subr.bf16.mxu1 %v3687_v20  ;;  %v3775_v19 = vld [vmem:[%s5403_s0 + $0x10] ss:$24 sps:$4 sm:$0xff]  }
  0x89   :  { %v4688_v20 = vld [vmem:[%s5404_s2] ss:$16 sps:$4 sm:$0xff]  }
  0x8a   :  { %1458 = vmatmul.mubr.bf16.gmra.mrb[4].mxu0 %v3732_v23  ;;  %1677 = vmatmul.mubr.bf16.gmra.mrb[4].mxu1 %v3732_v23  ;;  %v4705_v23 = vld [vmem:[%s5404_s2 + $0x2c] ss:$16 sps:$4 sm:$0xff]  }
  0x8b   :  { %1493 = vmatpush1.bf16.msra.mxu0 %v3682_v21  ;;  %1712 = vmatpush1.bf16.msra.mxu1 %v3685_v22  ;;  %v4693_v21 = vld [vmem:[%s5404_s2 + $0x8] ss:$16 sps:$4 sm:$0xff]   ;;  %v4700_v22 = vld [vmem:[%s5404_s2 + $0x24] ss:$16 sps:$4 sm:$0xff]  }
  0x8c   :  { %1494 = vmatprep.subr.bf16.mxu0 %v3690_v24  ;;  %1713 = vmatprep.subr.bf16.mxu1 %v3693_v25  ;;  %v3790_v24 = vld [vmem:[%s5403_s0 + $0x44] ss:$24 sps:$4 sm:$0xff]   ;;  %v4715_v25 = vld [vmem:[%s5404_s2 + $0x20] ss:$16 sps:$4 sm:$0xff]  }
  0x8d   :  { %1467 = vmatprep.mubr.bf16.mxu0 %v3745_v26  ;;  %1686 = vmatprep.mubr.bf16.mxu1 %v3745_v26  ;;  %v4720_v26 = vld [vmem:[%s5404_s2 + $0x28] ss:$16 sps:$4 sm:$0xff]  }
  0x8f   :  { %1495 = vmatpush1.bf16.msra.mxu0 %v3688_v27  ;;  %1714 = vmatpush1.bf16.msra.mxu1 %v3691_v28  ;;  %v4727_v27 = vld [vmem:[%s5404_s2 + $0x44] ss:$16 sps:$4 sm:$0xff]   ;;  %v4732_v28 = vld [vmem:[%s5404_s2 + $0x4c] ss:$16 sps:$4 sm:$0xff]  }
  0x90   :  { %1496 = vmatprep.subr.bf16.mxu0 %v3696_v29  ;;  %1715 = vmatprep.subr.bf16.mxu1 %v3699_v30  ;;  %v3792_v29 = vld [vmem:[%s5403_s0 + $0x40] ss:$24 sps:$4 sm:$0xff]  }
  0x91   :  { %v4742_v30 = vld [vmem:[%s5404_s2 + $0x40] ss:$16 sps:$4 sm:$0xff]  }
  0x92   :  { %1468 = vmatmul.mubr.bf16.gmra.mrb[8].mxu0 %v3747_v32  ;;  %1687 = vmatmul.mubr.bf16.gmra.mrb[8].mxu1 %v3747_v32  ;;  %v4754_v32 = vld [vmem:[%s5404_s2 + $0x64] ss:$16 sps:$4 sm:$0xff]  }
  0x93   :  { %1497 = vmatpush1.bf16.msra.mxu0 %v3694_v31  ;;  %1716 = vmatpush1.bf16.msra.mxu1 %v3697_v33  ;;  %v4747_v31 = vld [vmem:[%s5404_s2 + $0x48] ss:$16 sps:$4 sm:$0xff]   ;;  %v4759_v33 = vld [vmem:[%s5404_s2 + $0x6c] ss:$16 sps:$4 sm:$0xff]  }
  0x94   :  { %1498 = vmatprep.subr.bf16.mxu0 %v3702_v34  ;;  %1717 = vmatprep.subr.bf16.mxu1 %v3705_v35  ;;  %v3805_v34 = vld [vmem:[%s5403_s0 + $0x74] ss:$24 sps:$4 sm:$0xff]   ;;  %v4769_v35 = vld [vmem:[%s5404_s2 + $0x60] ss:$16 sps:$4 sm:$0xff]  }
  0x95   :  { %1477 = vmatprep.mubr.bf16.mxu0 %v3760_v36  ;;  %1696 = vmatprep.mubr.bf16.mxu1 %v3760_v36  ;;  %v4774_v36 = vld [vmem:[%s5404_s2 + $0x68] ss:$16 sps:$4 sm:$0xff]  }
  0x97   :  { %1499 = vmatpush1.bf16.msra.mxu0 %v3700_v37  ;;  %1718 = vmatpush1.bf16.msra.mxu1 %v3703_v38  ;;  %v4781_v37 = vld [vmem:[%s5404_s2 + $0x84] ss:$16 sps:$4 sm:$0xff]   ;;  %v4786_v38 = vld [vmem:[%s5404_s2 + $0x8c] ss:$16 sps:$4 sm:$0xff]  }
  0x98   :  { %1500 = vmatprep.subr.bf16.mxu0 %v3708_v39  ;;  %1719 = vmatprep.subr.bf16.mxu1 %v3711_v40  ;;  %v3807_v39 = vld [vmem:[%s5403_s0 + $0x70] ss:$24 sps:$4 sm:$0xff]  }
  0x99   :  { %v4796_v40 = vld [vmem:[%s5404_s2 + $0x80] ss:$16 sps:$4 sm:$0xff]  }
  0x9a   :  { %1478 = vmatmul.mubr.bf16.gmra.mrb[12].mxu0 %v3762_v43  ;;  %1697 = vmatmul.mubr.bf16.gmra.mrb[12].mxu1 %v3762_v43  ;;  %v4813_v43 = vld [vmem:[%s5404_s2 + $0xac] ss:$16 sps:$4 sm:$0xff]  }
  0x9b   :  { %1501 = vmatpush1.bf16.msra.mxu0 %v3706_v41  ;;  %1720 = vmatpush1.bf16.msra.mxu1 %v3709_v42  ;;  %v4801_v41 = vld [vmem:[%s5404_s2 + $0x88] ss:$16 sps:$4 sm:$0xff]   ;;  %v4808_v42 = vld [vmem:[%s5404_s2 + $0xa4] ss:$16 sps:$4 sm:$0xff]  }
  0x9c   :  { %1502 = vmatprep.subr.bf16.mxu0 %v3714_v44  ;;  %1721 = vmatprep.subr.bf16.mxu1 %v3717_v45  ;;  %v3820_v44 = vld [vmem:[%s5403_s0 + $0xa4] ss:$24 sps:$4 sm:$0xff]   ;;  %v4823_v45 = vld [vmem:[%s5404_s2 + $0xa0] ss:$16 sps:$4 sm:$0xff]  }
  0x9d   :  { %1520 = vmatprep.mubr.bf16.mxu0 %v3777_v46  ;;  %1739 = vmatprep.mubr.bf16.mxu1 %v3777_v46  ;;  %v4828_v46 = vld [vmem:[%s5404_s2 + $0xa8] ss:$16 sps:$4 sm:$0xff]  }
  0x9f   :  { %1503 = vmatpush1.bf16.msra.mxu0 %v3712_v47  ;;  %1722 = vmatpush1.bf16.msra.mxu1 %v3715_v48  ;;  %v4835_v47 = vld [vmem:[%s5404_s2 + $0xc4] ss:$16 sps:$4 sm:$0xff]   ;;  %v4840_v48 = vld [vmem:[%s5404_s2 + $0xcc] ss:$16 sps:$4 sm:$0xff]  }
  0xa0   :  { %1504 = vmatprep.subr.bf16.mxu0 %v3720_v49  ;;  %1723 = vmatprep.subr.bf16.mxu1 %v3723_v50  ;;  %v3822_v49 = vld [vmem:[%s5403_s0 + $0xa0] ss:$24 sps:$4 sm:$0xff]  }
  0xa1   :  { %v4850_v50 = vld [vmem:[%s5404_s2 + $0xc0] ss:$16 sps:$4 sm:$0xff]  }
  0xa3   :  { %1505 = vmatpush1.bf16.msra.mxu0 %v3718_v51  ;;  %1724 = vmatpush1.bf16.msra.mxu1 %v3721_v52  ;;  %v4855_v51 = vld [vmem:[%s5404_s2 + $0xc8] ss:$16 sps:$4 sm:$0xff]   ;;  %v4862_v52 = vld [vmem:[%s5404_s2 + $0xe4] ss:$16 sps:$4 sm:$0xff]  }
  0xa4   :  { %1506 = vmatprep.subr.bf16.mxu0 %v3726_v53  ;;  %1725 = vmatprep.subr.bf16.mxu1 %v3729_v54  ;;  %v4867_v53 = vld [vmem:[%s5404_s2 + $0xec] ss:$16 sps:$4 sm:$0xff]   ;;  %v4874_v54 = vld [vmem:[%s5404_s2 + $0xe0] ss:$16 sps:$4 sm:$0xff]  }
  0xa7   :  { %1507 = vmatpush1.bf16.msra.mxu0 %v3724_v55  ;;  %1726 = vmatpush1.bf16.msra.mxu1 %v3727_v56  ;;  %v4879_v55 = vld [vmem:[%s5404_s2 + $0xe8] ss:$16 sps:$4 sm:$0xff]   ;;  %v5409_v56 = vmov 0  }
  0xa8   :  { %1508 = vmatprep.subr.bf16.mxu0 %v3735_v57  ;;  %1727 = vmatprep.subr.bf16.mxu1 %v3738_v58  ;;  %v242_v57 = vlaneseq }
  0xaa   :  { %v243_v58 = vshrl.u32 %v242_v57, 7 }
  0xab   :  { %1509 = vmatpush1.bf16.msra.mxu0 %v3733_v59  ;;  %1728 = vmatpush1.bf16.msra.mxu1 %v3736_v60 }
  0xac   :  { %1510 = vmatprep.subr.bf16.mxu0 %v3741_v61  ;;  %1729 = vmatprep.subr.bf16.mxu1 %v3744_v62  ;;  %v244_v59 = vsub.s32 0, %v243_v58  ;;  %v252_v60 = vsub.s32 2, %v243_v58  ;;  %v240_v61 = vld [vmem:[%s5405_s3] sm:$0xf]  ;;  %v248_v62 = vsub.s32 1, %v243_v58 }
  0xaf   :  { %1511 = vmatpush1.bf16.msra.mxu0 %v3739_v63  ;;  %1730 = vmatpush1.bf16.msra.mxu1 %v3742_v0  ;;  %v256_v63 = vsub.s32 3, %v243_v58 }
  0xb0   :  { %1512 = vmatprep.subr.bf16.mxu0 %v3750_v1  ;;  %1731 = vmatprep.subr.bf16.mxu1 %v3753_v2  ;;  %v245_v2 = vrot.slane %v240_v61, %v244_v59 }
  0xb3   :  { %1513 = vmatpush1.bf16.msra.mxu0 %v3748_v3  ;;  %1732 = vmatpush1.bf16.msra.mxu1 %v3751_v4  ;;  %v253_v3 = vrot.slane %v240_v61, %v252_v60 }
  0xb4   :  { %1514 = vmatprep.subr.bf16.mxu0 %v3756_v5  ;;  %1733 = vmatprep.subr.bf16.mxu1 %v3759_v6  ;;  %v249_v6 = vrot.slane %v240_v61, %v248_v62 }
  0xb7   :  { %1515 = vmatpush1.bf16.msra.mxu0 %v3754_v7  ;;  %1734 = vmatpush1.bf16.msra.mxu1 %v3757_v8  ;;  %v257_v7 = vrot.slane %v240_v61, %v256_v63 }
  0xb8   :  { %1516 = vmatprep.subr.bf16.mxu0 %v3765_v9  ;;  %1735 = vmatprep.subr.bf16.mxu1 %v3768_v10 }
  0xbb   :  { %1517 = vmatpush1.bf16.msra.mxu0 %v3763_v11  ;;  %1736 = vmatpush1.bf16.msra.mxu1 %v3766_v12 }
  0xbc   :  { %1518 = vmatprep.subr.bf16.mxu0 %v3771_v13  ;;  %1737 = vmatprep.subr.bf16.mxu1 %v3774_v14 }
  0xbf   :  { %1519 = vmatpush1.bf16.msra.mxu0 %v3769_v15  ;;  %1738 = vmatpush1.bf16.msra.mxu1 %v3772_v16 }
  0xc0   :  { %2008 = vmatprep.subr.bf16.mxu0 %v4675_v17  ;;  %2049 = vmatprep.subr.bf16.mxu1 %v4680_v18 }
  0xc2   :  { %1521 = vmatmul.mubr.bf16.vlgmr.msra.gmra.mrb[0].mxu0 %v3775_v19  ;;  %1740 = vmatmul.mubr.bf16.vlgmr.msra.gmra.mrb[0].mxu1 %v3775_v19 }
  0xc3   :  { %2009 = vmatpush1.bf16.msra.mxu0 %v4688_v20  ;;  %2050 = vmatpush1.bf16.msra.mxu1 %v4693_v21 }
  0xc4   :  { %2010 = vmatprep.subr.bf16.mxu0 %v4700_v22  ;;  %2051 = vmatprep.subr.bf16.mxu1 %v4705_v23 }
  0xc5   :  { %1530 = vmatprep.mubr.bf16.mxu0 %v3790_v24  ;;  %1749 = vmatprep.mubr.bf16.mxu1 %v3790_v24 }
  0xc7   :  { %2011 = vmatpush1.bf16.msra.mxu0 %v4715_v25  ;;  %2052 = vmatpush1.bf16.msra.mxu1 %v4720_v26 }
  0xc8   :  { %2012 = vmatprep.subr.bf16.mxu0 %v4727_v27  ;;  %2053 = vmatprep.subr.bf16.mxu1 %v4732_v28 }
  0xca   :  { %1531 = vmatmul.mubr.bf16.gmra.mrb[4].mxu0 %v3792_v29  ;;  %1750 = vmatmul.mubr.bf16.gmra.mrb[4].mxu1 %v3792_v29 }
  0xcb   :  { %2013 = vmatpush1.bf16.msra.mxu0 %v4742_v30  ;;  %2054 = vmatpush1.bf16.msra.mxu1 %v4747_v31 }
  0xcc   :  { %2014 = vmatprep.subr.bf16.mxu0 %v4754_v32  ;;  %2055 = vmatprep.subr.bf16.mxu1 %v4759_v33 }
  0xcd   :  { %1540 = vmatprep.mubr.bf16.mxu0 %v3805_v34  ;;  %1759 = vmatprep.mubr.bf16.mxu1 %v3805_v34 }
  0xcf   :  { %2015 = vmatpush1.bf16.msra.mxu0 %v4769_v35  ;;  %2056 = vmatpush1.bf16.msra.mxu1 %v4774_v36 }
  0xd0   :  { %2016 = vmatprep.subr.bf16.mxu0 %v4781_v37  ;;  %2057 = vmatprep.subr.bf16.mxu1 %v4786_v38 }
  0xd2   :  { %1541 = vmatmul.mubr.bf16.gmra.mrb[8].mxu0 %v3807_v39  ;;  %1760 = vmatmul.mubr.bf16.gmra.mrb[8].mxu1 %v3807_v39 }
  0xd3   :  { %2017 = vmatpush1.bf16.msra.mxu0 %v4796_v40  ;;  %2058 = vmatpush1.bf16.msra.mxu1 %v4801_v41 }
  0xd4   :  { %2018 = vmatprep.subr.bf16.mxu0 %v4808_v42  ;;  %2059 = vmatprep.subr.bf16.mxu1 %v4813_v43 }
  0xd5   :  { %1550 = vmatprep.mubr.bf16.mxu0 %v3820_v44  ;;  %1769 = vmatprep.mubr.bf16.mxu1 %v3820_v44 }
  0xd7   :  { %2019 = vmatpush1.bf16.msra.mxu0 %v4823_v45  ;;  %2060 = vmatpush1.bf16.msra.mxu1 %v4828_v46 }
  0xd8   :  { %2020 = vmatprep.subr.bf16.mxu0 %v4835_v47  ;;  %2061 = vmatprep.subr.bf16.mxu1 %v4840_v48 }
  0xda   :  { %1551 = vmatmul.mubr.bf16.gmra.mrb[12].mxu0 %v3822_v49  ;;  %1770 = vmatmul.mubr.bf16.gmra.mrb[12].mxu1 %v3822_v49 }
  0xdb   :  { %2021 = vmatpush1.bf16.msra.mxu0 %v4850_v50  ;;  %2062 = vmatpush1.bf16.msra.mxu1 %v4855_v51 }
  0xdc   :  { %2022 = vmatprep.subr.bf16.mxu0 %v4862_v52  ;;  %2063 = vmatprep.subr.bf16.mxu1 %v4867_v53 }
  0xdd   :  { %2040 = vmatprep.mubr.bf16.mxu0 %v5409_v56  ;;  %2081 = vmatprep.mubr.bf16.mxu1 %v5409_v56 }
  0xdf   :  { %2023 = vmatpush1.bf16.msra.mxu0 %v4874_v54  ;;  %2064 = vmatpush1.bf16.msra.mxu1 %v4879_v55 }
  0xe0   :  { %2124 = vmatprep.subr.bf16.mxu0 %v4675_v17  ;;  %2165 = vmatprep.subr.bf16.mxu1 %v4680_v18 }
  0xe2   :  { %2041 = vmatmul.mubr.bf16.vlgmr.msra.gmra.mrb[16].mxu0 %v5409_v56  ;;  %2082 = vmatmul.mubr.bf16.vlgmr.msra.gmra.mrb[16].mxu1 %v5409_v56 }
  0xe3   :  { %2125 = vmatpush1.bf16.msra.mxu0 %v4688_v20  ;;  %2166 = vmatpush1.bf16.msra.mxu1 %v4693_v21 }
  0xe4   :  { %2126 = vmatprep.subr.bf16.mxu0 %v4700_v22  ;;  %2167 = vmatprep.subr.bf16.mxu1 %v4705_v23 }
  0xe5   :  { %2156 = vmatprep.mubr.bf16.mxu0 %v5409_v56  ;;  %2197 = vmatprep.mubr.bf16.mxu1 %v5409_v56 }
  0xe7   :  { %2127 = vmatpush1.bf16.msra.mxu0 %v4715_v25  ;;  %2168 = vmatpush1.bf16.msra.mxu1 %v4720_v26 }
  0xe8   :  { %2128 = vmatprep.subr.bf16.mxu0 %v4727_v27  ;;  %2169 = vmatprep.subr.bf16.mxu1 %v4732_v28 }
  0xeb   :  { %2129 = vmatpush1.bf16.msra.mxu0 %v4742_v30  ;;  %2170 = vmatpush1.bf16.msra.mxu1 %v4747_v31 }
  0xec   :  { %2130 = vmatprep.subr.bf16.mxu0 %v4754_v32  ;;  %2171 = vmatprep.subr.bf16.mxu1 %v4759_v33 }
  0xef   :  { %2131 = vmatpush1.bf16.msra.mxu0 %v4769_v35  ;;  %2172 = vmatpush1.bf16.msra.mxu1 %v4774_v36 }
  0xf0   :  { %2132 = vmatprep.subr.bf16.mxu0 %v4781_v37  ;;  %2173 = vmatprep.subr.bf16.mxu1 %v4786_v38 }
  0xf3   :  { %2133 = vmatpush1.bf16.msra.mxu0 %v4796_v40  ;;  %2174 = vmatpush1.bf16.msra.mxu1 %v4801_v41 }
  0xf4   :  { %2134 = vmatprep.subr.bf16.mxu0 %v4808_v42  ;;  %2175 = vmatprep.subr.bf16.mxu1 %v4813_v43 }
  0xf7   :  { %2135 = vmatpush1.bf16.msra.mxu0 %v4823_v45  ;;  %2176 = vmatpush1.bf16.msra.mxu1 %v4828_v46 }
  0xf8   :  { %2136 = vmatprep.subr.bf16.mxu0 %v4835_v47  ;;  %2177 = vmatprep.subr.bf16.mxu1 %v4840_v48 }
  0xfb   :  { %2137 = vmatpush1.bf16.msra.mxu0 %v4850_v50  ;;  %2178 = vmatpush1.bf16.msra.mxu1 %v4855_v51 }
  0xfc   :  { %2138 = vmatprep.subr.bf16.mxu0 %v4862_v52  ;;  %2179 = vmatprep.subr.bf16.mxu1 %v4867_v53 }
  0xff   :  { %2139 = vmatpush1.bf16.msra.mxu0 %v4874_v54  ;;  %2180 = vmatpush1.bf16.msra.mxu1 %v4879_v55 }
 0x100   :  { %2240 = vmatprep.subr.bf16.mxu0 %v4675_v17  ;;  %2281 = vmatprep.subr.bf16.mxu1 %v4680_v18 }
 0x195   :  { %v4928_v0 = vpop.f32.mrb[0].mxu0  ;;  %v4930_v1 = vpop.f32.mrb[0].mxu1 }
 0x196   :  { %v1524_v4 = vpop.f32.mrb[1].mxu0  ;;  %v1743_v5 = vpop.f32.mrb[1].mxu1 }
 0x197   :  { %v1526_v8 = vpop.f32.mrb[2].mxu0  ;;  %v1745_v9 = vpop.f32.mrb[2].mxu1 }
 0x198   :  { %v4932_v10 = vadd.f32 %v1526_v8, %v245_v2  ;;  %v4934_v11 = vadd.f32 %v1745_v9, %v253_v3  ;;  %v1528_v12 = vpop.f32.mrb[3].mxu0  ;;  %v1747_v13 = vpop.f32.mrb[3].mxu1 }
 0x199   :  { %v4936_v14 = vadd.f32 %v1528_v12, %v249_v6  ;;  %v4938_v15 = vadd.f32 %v1747_v13, %v257_v7 }
 0x19d   :  { %v1532_v16 = vpop.f32.mrb[4].mxu0  ;;  %v1751_v19 = vpop.f32.mrb[4].mxu1 }
 0x19e   :  { %v4940_v24 = vadd.f32 %v1532_v16, %v245_v2  ;;  %v4942_v29 = vadd.f32 %v1751_v19, %v253_v3  ;;  %v1534_v34 = vpop.f32.mrb[5].mxu0  ;;  %v1753_v39 = vpop.f32.mrb[5].mxu1 }
 0x19f   :  { %v4944_v44 = vadd.f32 %v1534_v34, %v249_v6  ;;  %v4946_v49 = vadd.f32 %v1753_v39, %v257_v7  ;;  %v1536_v57 = vpop.f32.mrb[6].mxu0  ;;  %v1755_v58 = vpop.f32.mrb[6].mxu1 }
 0x1a0   :  { %v4948_v59 = vadd.f32 %v1536_v57, %v245_v2  ;;  %v4950_v60 = vadd.f32 %v1755_v58, %v253_v3  ;;  %v1538_v61 = vpop.f32.mrb[7].mxu0  ;;  %v1757_v62 = vpop.f32.mrb[7].mxu1 }
 0x1a1   :  { %5411 = vst [vmem:[#allocation3_spill] sm:$0xff] %v4944_v44  ;;  %5412 = vst [vmem:[#allocation4_spill] sm:$0xff] %v4946_v49  ;;  %v4952_v63 = vadd.f32 %v1538_v61, %v249_v6  ;;  %v4954_v8 = vadd.f32 %v1757_v62, %v257_v7 }
 0x1a2   :  { %5413 = vst [vmem:[#allocation5_spill] sm:$0xff] %v4948_v59  ;;  %5414 = vst [vmem:[#allocation6_spill] sm:$0xff] %v4950_v60 }
 0x1a3   :  { %5415 = vst [vmem:[#allocation7_spill] sm:$0xff] %v4952_v63  ;;  %5416 = vst [vmem:[#allocation8_spill] sm:$0xff] %v4954_v8 }
 0x1a5   :  { %v1542_v9 = vpop.f32.mrb[8].mxu0  ;;  %v1761_v12 = vpop.f32.mrb[8].mxu1 }
 0x1a6   :  { %v4956_v13 = vadd.f32 %v1542_v9, %v245_v2  ;;  %v4958_v16 = vadd.f32 %v1761_v12, %v253_v3  ;;  %v1544_v19 = vpop.f32.mrb[9].mxu0  ;;  %v1763_v34 = vpop.f32.mrb[9].mxu1 }
 0x1a7   :  { %v4960_v39 = vadd.f32 %v1544_v19, %v249_v6  ;;  %v4962_v57 = vadd.f32 %v1763_v34, %v257_v7  ;;  %v1546_v58 = vpop.f32.mrb[10].mxu0  ;;  %v1765_v56 = vpop.f32.mrb[10].mxu1 }
 0x1a8   :  { %5417 = vst [vmem:[#allocation9_spill] sm:$0xff] %v4956_v13  ;;  %5418 = vst [vmem:[#allocation10_spill] sm:$0xff] %v4958_v16  ;;  %v4964_v60 = vadd.f32 %v1546_v58, %v245_v2  ;;  %v4966_v61 = vadd.f32 %v1765_v56, %v253_v3  ;;  %v1548_v62 = vpop.f32.mrb[11].mxu0  ;;  %v1767_v8 = vpop.f32.mrb[11].mxu1 }
 0x1a9   :  { %5419 = vst [vmem:[#allocation11_spill] sm:$0xff] %v4960_v39  ;;  %5420 = vst [vmem:[#allocation12_spill] sm:$0xff] %v4962_v57  ;;  %v4968_v63 = vadd.f32 %v1548_v62, %v249_v6  ;;  %v4970_v9 = vadd.f32 %v1767_v8, %v257_v7 }
 0x1aa   :  { %5421 = vst [vmem:[#allocation13_spill] sm:$0xff] %v4964_v60  ;;  %5422 = vst [vmem:[#allocation14_spill] sm:$0xff] %v4966_v61 }
 0x1ab   :  { %5423 = vst [vmem:[#allocation15_spill] sm:$0xff] %v4968_v63  ;;  %5424 = vst [vmem:[#allocation16_spill] sm:$0xff] %v4970_v9 }
 0x1ad   :  { %v1552_v12 = vpop.f32.mrb[12].mxu0  ;;  %v1771_v16 = vpop.f32.mrb[12].mxu1 }
 0x1ae   :  { %v4972_v13 = vadd.f32 %v1552_v12, %v245_v2  ;;  %v4974_v19 = vadd.f32 %v1771_v16, %v253_v3  ;;  %v1554_v34 = vpop.f32.mrb[13].mxu0  ;;  %v1773_v57 = vpop.f32.mrb[13].mxu1  ;;  %v3364_v16 = vadd.f32 %v4928_v0, %v245_v2 }
 0x1af   :  { %v4976_v39 = vadd.f32 %v1554_v34, %v249_v6  ;;  %v4978_v58 = vadd.f32 %v1773_v57, %v257_v7  ;;  %v1556_v56 = vpop.f32.mrb[14].mxu0  ;;  %v1775_v61 = vpop.f32.mrb[14].mxu1  ;;  %v3365_v34 = vadd.f32 %v1524_v4, %v249_v6 }
 0x1b0   :  { %5425 = vst [vmem:[#allocation17_spill] sm:$0xff] %v4972_v13  ;;  %5426 = vst [vmem:[#allocation18_spill] sm:$0xff] %v4974_v19  ;;  %v4980_v60 = vadd.f32 %v1556_v56, %v245_v2  ;;  %v4982_v62 = vadd.f32 %v1775_v61, %v253_v3  ;;  %v1558_v8 = vpop.f32.mrb[15].mxu0  ;;  %v1777_v9 = vpop.f32.mrb[15].mxu1  ;;  %v3380_v19 = vadd.f32 %v4930_v1, %v253_v3 }
 0x1b1   :  { %5427 = vst [vmem:[#allocation19_spill] sm:$0xff] %v4976_v39  ;;  %5428 = vst [vmem:[#allocation20_spill] sm:$0xff] %v4978_v58  ;;  %v4984_v63 = vadd.f32 %v1558_v8, %v249_v6  ;;  %v4986_v12 = vadd.f32 %v1777_v9, %v257_v7  ;;  %v3381_v39 = vadd.f32 %v1743_v5, %v257_v7 }
 0x1b2   :  { %5429 = vst [vmem:[#allocation21_spill] sm:$0xff] %v4980_v60  ;;  %5430 = vst [vmem:[#allocation22_spill] sm:$0xff] %v4982_v62 }
 0x1b3   :  { %5431 = vst [vmem:[#allocation23_spill] sm:$0xff] %v4984_v63  ;;  %5432 = vst [vmem:[#allocation24_spill] sm:$0xff] %v4986_v12 }
 0x1b5   :  { %v2042_v57 = vpop.f32.mrb[16].mxu0  ;;  %v2083_v58 = vpop.f32.mrb[16].mxu1 }
 0x1b6   :  { %v2090_v13 = vadd.f32 %v3364_v16, %v2042_v57  ;;  %v2092_v59 = vadd.f32 %v3380_v19, %v2083_v58  ;;  %v2044_v56 = vpop.f32.mrb[17].mxu0  ;;  %v2085_v60 = vpop.f32.mrb[17].mxu1 }
 0x1b7   :  { %v2091_v61 = vadd.f32 %v3365_v34, %v2044_v56  ;;  %v2093_v62 = vadd.f32 %v3381_v39, %v2085_v60  ;;  %v2046_v49 = vpop.f32.mrb[18].mxu0  ;;  %v2087_v44 = vpop.f32.mrb[18].mxu1 }
 0x1b8   :  { %v3301_v8 = vmul.f32 -1.442695, %v2090_v13  ;;  %v2047_v63 = vpop.f32.mrb[19].mxu0  ;;  %v2088_v9 = vpop.f32.mrb[19].mxu1 }
 0x1b9   :  { %v3302_v12 = vmul.f32 -1.442695, %v2091_v61  ;;  %v3303_v0 = vmul.f32 -1.442695, %v2093_v62 }
 0x1ba   :  { %3843 = vpow2.f32 %v3301_v8 }
 0x1bb   :  { %3845 = vpow2.f32 %v3302_v12 }
 0x1bc   :  { %3847 = vpow2.f32 %v3303_v0 }
 0x1bd   :  { %3849 = vtanh.f32 %v2092_v59  ;;  %v5433_v59 = vmov 0  }
 0x1c4   :  { %v3844_v1 = vpop.eup %3843 }
 0x1c5   :  { %v3846_v2 = vpop.eup %3845  ;;  %v2097_v3 = vadd.f32 1.0, %v3844_v1 }
 0x1c6   :  { %v2103_v4 = vadd.f32 1.0, %v3846_v2  ;;  %v3848_v5 = vpop.eup %3847 }
 0x1c7   :  { %3851 = vrcp.f32 %v2097_v3  ;;  %v3850_v6 = vpop.eup %3849  ;;  %v2110_v60 = vadd.f32 1.0, %v3848_v5 }
 0x1c8   :  { %3853 = vrcp.f32 %v2103_v4 }
 0x1c9   :  { %3855 = vrcp.f32 %v2110_v60 }
 0x1d1   :  { %v3852_v7 = vpop.eup %3851 }
 0x1d2   :  { %v3854_v49 = vpop.eup %3853  ;;  %v2114_v44 = vmul.f32 %v3852_v7, %v3850_v6 }
 0x1d3   :  { %v2113_v63 = vmul.f32 0.0, %v3854_v49  ;;  %v3856_v39 = vpop.eup %3855 }
 0x1d5   :  { %v4990_v13 = vadd.f32 %v2114_v44, %v2113_v63 }
 0x1d7   :  { %3857 = vtanh.f32 %v4990_v13 }
 0x1e1   :  { %v3858_v19 = vpop.eup %3857 }
 0x1e2   :  { %v2117_v58 = vmul.f32 %v3858_v19, %v3856_v39 }
 0x1e4   :  { %v2123_v62 = vpack.c.bf16 %v2117_v58, %v2117_v58 }
 0x1e6   :  { %2157 = vmatmul.mubr.bf16.vlgmr.msra.gmra.mrb[20].mxu0 %v2123_v62  ;;  %2198 = vmatmul.mubr.bf16.vlgmr.msra.gmra.mrb[20].mxu1 %v2123_v62 }
 0x1e7   :  { %2241 = vmatpush1.bf16.msra.mxu0 %v4688_v20  ;;  %2282 = vmatpush1.bf16.msra.mxu1 %v4693_v21 }
 0x1e8   :  { %2242 = vmatprep.subr.bf16.mxu0 %v4700_v22  ;;  %2283 = vmatprep.subr.bf16.mxu1 %v4705_v23 }
 0x1e9   :  { %2272 = vmatprep.mubr.bf16.mxu0 %v5433_v59  ;;  %2313 = vmatprep.mubr.bf16.mxu1 %v5433_v59 }
 0x1eb   :  { %2243 = vmatpush1.bf16.msra.mxu0 %v4715_v25  ;;  %2284 = vmatpush1.bf16.msra.mxu1 %v4720_v26 }
 0x1ec   :  { %2244 = vmatprep.subr.bf16.mxu0 %v4727_v27  ;;  %2285 = vmatprep.subr.bf16.mxu1 %v4732_v28 }
 0x1ef   :  { %2245 = vmatpush1.bf16.msra.mxu0 %v4742_v30  ;;  %2286 = vmatpush1.bf16.msra.mxu1 %v4747_v31 }
 0x1f0   :  { %2246 = vmatprep.subr.bf16.mxu0 %v4754_v32  ;;  %2287 = vmatprep.subr.bf16.mxu1 %v4759_v33 }
 0x1f3   :  { %2247 = vmatpush1.bf16.msra.mxu0 %v4769_v35  ;;  %2288 = vmatpush1.bf16.msra.mxu1 %v4774_v36 }
 0x1f4   :  { %2248 = vmatprep.subr.bf16.mxu0 %v4781_v37  ;;  %2289 = vmatprep.subr.bf16.mxu1 %v4786_v38 }
 0x1f7   :  { %2249 = vmatpush1.bf16.msra.mxu0 %v4796_v40  ;;  %2290 = vmatpush1.bf16.msra.mxu1 %v4801_v41 }
 0x1f8   :  { %2250 = vmatprep.subr.bf16.mxu0 %v4808_v42  ;;  %2291 = vmatprep.subr.bf16.mxu1 %v4813_v43 }
 0x1fb   :  { %2251 = vmatpush1.bf16.msra.mxu0 %v4823_v45  ;;  %2292 = vmatpush1.bf16.msra.mxu1 %v4828_v46 }
 0x1fc   :  { %2252 = vmatprep.subr.bf16.mxu0 %v4835_v47  ;;  %2293 = vmatprep.subr.bf16.mxu1 %v4840_v48 }
 0x1ff   :  { %2253 = vmatpush1.bf16.msra.mxu0 %v4850_v50  ;;  %2294 = vmatpush1.bf16.msra.mxu1 %v4855_v51 }
 0x200   :  { %2254 = vmatprep.subr.bf16.mxu0 %v4862_v52  ;;  %2295 = vmatprep.subr.bf16.mxu1 %v4867_v53 }
 0x203   :  { %2255 = vmatpush1.bf16.msra.mxu0 %v4874_v54  ;;  %2296 = vmatpush1.bf16.msra.mxu1 %v4879_v55 }
 0x204   :  { %2356 = vmatprep.subr.bf16.mxu0 %v4675_v17  ;;  %2397 = vmatprep.subr.bf16.mxu1 %v4680_v18 }
 0x2b9   :  { %v2158_v12 = vpop.f32.mrb[20].mxu0  ;;  %v2199_v16 = vpop.f32.mrb[20].mxu1 }
 0x2ba   :  { %v2206_v34 = vadd.f32 %v4932_v10, %v2158_v12  ;;  %v2208_v57 = vadd.f32 %v4934_v11, %v2199_v16  ;;  %v2160_v56 = vpop.f32.mrb[21].mxu0  ;;  %v2201_v61 = vpop.f32.mrb[21].mxu1 }
 0x2bb   :  { %v2207_v8 = vadd.f32 %v4936_v14, %v2160_v56  ;;  %v2209_v9 = vadd.f32 %v4938_v15, %v2201_v61  ;;  %v2162_v0 = vpop.f32.mrb[22].mxu0  ;;  %v2203_v1 = vpop.f32.mrb[22].mxu1 }
 0x2bc   :  { %v3304_v2 = vmul.f32 -1.442695, %v2206_v34  ;;  %v2163_v3 = vpop.f32.mrb[23].mxu0  ;;  %v2204_v4 = vpop.f32.mrb[23].mxu1  ;;  %v5434_v0 = vld [vmem:[#allocation3_spill] sm:$0xff] }
 0x2bd   :  { %v3305_v5 = vmul.f32 -1.442695, %v2207_v8  ;;  %v3306_v6 = vmul.f32 -1.442695, %v2209_v9 }
 0x2be   :  { %3859 = vpow2.f32 %v3304_v2  ;;  %v5435_v2 = vld [vmem:[#allocation4_spill] sm:$0xff] }
 0x2bf   :  { %3861 = vpow2.f32 %v3305_v5 }
 0x2c0   :  { %3863 = vpow2.f32 %v3306_v6 }
 0x2c1   :  { %3865 = vtanh.f32 %v2208_v57 }
 0x2c8   :  { %v3860_v7 = vpop.eup %3859 }
 0x2c9   :  { %v3862_v49 = vpop.eup %3861  ;;  %v2213_v10 = vadd.f32 1.0, %v3860_v7 }
 0x2ca   :  { %v2219_v11 = vadd.f32 1.0, %v3862_v49  ;;  %v3864_v14 = vpop.eup %3863 }
 0x2cb   :  { %3867 = vrcp.f32 %v2213_v10  ;;  %v3866_v44 = vpop.eup %3865  ;;  %v2226_v39 = vadd.f32 1.0, %v3864_v14 }
 0x2cc   :  { %3869 = vrcp.f32 %v2219_v11 }
 0x2cd   :  { %3871 = vrcp.f32 %v2226_v39 }
 0x2d5   :  { %v3868_v15 = vpop.eup %3867 }
 0x2d6   :  { %v3870_v60 = vpop.eup %3869  ;;  %v2230_v63 = vmul.f32 %v3868_v15, %v3866_v44 }
 0x2d7   :  { %v2229_v19 = vmul.f32 %v3870_v60, %v4990_v13  ;;  %v3872_v62 = vpop.eup %3871 }
 0x2d9   :  { %v5032_v58 = vadd.f32 %v2230_v63, %v2229_v19 }
 0x2db   :  { %3873 = vtanh.f32 %v5032_v58 }
 0x2e5   :  { %v3874_v12 = vpop.eup %3873 }
 0x2e6   :  { %v2233_v16 = vmul.f32 %v3874_v12, %v3872_v62 }
 0x2e8   :  { %v2239_v34 = vpack.c.bf16 %v2233_v16, %v2233_v16 }
 0x2ea   :  { %2273 = vmatmul.mubr.bf16.vlgmr.msra.gmra.mrb[24].mxu0 %v2239_v34  ;;  %2314 = vmatmul.mubr.bf16.vlgmr.msra.gmra.mrb[24].mxu1 %v2239_v34 }
 0x2eb   :  { %2357 = vmatpush1.bf16.msra.mxu0 %v4688_v20  ;;  %2398 = vmatpush1.bf16.msra.mxu1 %v4693_v21 }
 0x2ec   :  { %2358 = vmatprep.subr.bf16.mxu0 %v4700_v22  ;;  %2399 = vmatprep.subr.bf16.mxu1 %v4705_v23 }
 0x2ed   :  { %2388 = vmatprep.mubr.bf16.mxu0 %v5433_v59  ;;  %2429 = vmatprep.mubr.bf16.mxu1 %v5433_v59 }
 0x2ef   :  { %2359 = vmatpush1.bf16.msra.mxu0 %v4715_v25  ;;  %2400 = vmatpush1.bf16.msra.mxu1 %v4720_v26 }
 0x2f0   :  { %2360 = vmatprep.subr.bf16.mxu0 %v4727_v27  ;;  %2401 = vmatprep.subr.bf16.mxu1 %v4732_v28 }
 0x2f3   :  { %2361 = vmatpush1.bf16.msra.mxu0 %v4742_v30  ;;  %2402 = vmatpush1.bf16.msra.mxu1 %v4747_v31 }
 0x2f4   :  { %2362 = vmatprep.subr.bf16.mxu0 %v4754_v32  ;;  %2403 = vmatprep.subr.bf16.mxu1 %v4759_v33 }
 0x2f7   :  { %2363 = vmatpush1.bf16.msra.mxu0 %v4769_v35  ;;  %2404 = vmatpush1.bf16.msra.mxu1 %v4774_v36 }
 0x2f8   :  { %2364 = vmatprep.subr.bf16.mxu0 %v4781_v37  ;;  %2405 = vmatprep.subr.bf16.mxu1 %v4786_v38 }
 0x2fb   :  { %2365 = vmatpush1.bf16.msra.mxu0 %v4796_v40  ;;  %2406 = vmatpush1.bf16.msra.mxu1 %v4801_v41 }
 0x2fc   :  { %2366 = vmatprep.subr.bf16.mxu0 %v4808_v42  ;;  %2407 = vmatprep.subr.bf16.mxu1 %v4813_v43 }
 0x2ff   :  { %2367 = vmatpush1.bf16.msra.mxu0 %v4823_v45  ;;  %2408 = vmatpush1.bf16.msra.mxu1 %v4828_v46 }
 0x300   :  { %2368 = vmatprep.subr.bf16.mxu0 %v4835_v47  ;;  %2409 = vmatprep.subr.bf16.mxu1 %v4840_v48 }
 0x303   :  { %2369 = vmatpush1.bf16.msra.mxu0 %v4850_v50  ;;  %2410 = vmatpush1.bf16.msra.mxu1 %v4855_v51 }
 0x304   :  { %2370 = vmatprep.subr.bf16.mxu0 %v4862_v52  ;;  %2411 = vmatprep.subr.bf16.mxu1 %v4867_v53 }
 0x307   :  { %2371 = vmatpush1.bf16.msra.mxu0 %v4874_v54  ;;  %2412 = vmatpush1.bf16.msra.mxu1 %v4879_v55 }
 0x308   :  { %2472 = vmatprep.subr.bf16.mxu0 %v4675_v17  ;;  %2513 = vmatprep.subr.bf16.mxu1 %v4680_v18 }
 0x3bd   :  { %v2274_v13 = vpop.f32.mrb[24].mxu0  ;;  %v2315_v57 = vpop.f32.mrb[24].mxu1 }
 0x3be   :  { %v2322_v56 = vadd.f32 %v4940_v24, %v2274_v13  ;;  %v2324_v61 = vadd.f32 %v4942_v29, %v2315_v57  ;;  %v2276_v8 = vpop.f32.mrb[25].mxu0  ;;  %v2317_v9 = vpop.f32.mrb[25].mxu1 }
 0x3bf   :  { %v2323_v1 = vadd.f32 %v5434_v0, %v2276_v8  ;;  %v2325_v3 = vadd.f32 %v5435_v2, %v2317_v9  ;;  %v2278_v4 = vpop.f32.mrb[26].mxu0  ;;  %v2319_v5 = vpop.f32.mrb[26].mxu1  ;;  %v5436_v8 = vld [vmem:[#allocation5_spill] sm:$0xff]  ;;  %v5437_v0 = vld [vmem:[#allocation6_spill] sm:$0xff] }
 0x3c0   :  { %v3307_v6 = vmul.f32 -1.442695, %v2322_v56  ;;  %v2279_v7 = vpop.f32.mrb[27].mxu0  ;;  %v2320_v49 = vpop.f32.mrb[27].mxu1  ;;  %v5438_v4 = vld [vmem:[#allocation7_spill] sm:$0xff] }
 0x3c1   :  { %v3308_v10 = vmul.f32 -1.442695, %v2323_v1  ;;  %v3309_v11 = vmul.f32 -1.442695, %v2325_v3 }
 0x3c2   :  { %3875 = vpow2.f32 %v3307_v6  ;;  %v5439_v6 = vld [vmem:[#allocation8_spill] sm:$0xff] }
 0x3c3   :  { %3877 = vpow2.f32 %v3308_v10 }
 0x3c4   :  { %3879 = vpow2.f32 %v3309_v11 }
 0x3c5   :  { %3881 = vtanh.f32 %v2324_v61 }
 0x3cc   :  { %v3876_v14 = vpop.eup %3875 }
 0x3cd   :  { %v3878_v44 = vpop.eup %3877  ;;  %v2329_v24 = vadd.f32 1.0, %v3876_v14 }
 0x3ce   :  { %v2335_v29 = vadd.f32 1.0, %v3878_v44  ;;  %v3880_v15 = vpop.eup %3879 }
 0x3cf   :  { %3883 = vrcp.f32 %v2329_v24  ;;  %v3882_v60 = vpop.eup %3881  ;;  %v2342_v62 = vadd.f32 1.0, %v3880_v15 }
 0x3d0   :  { %3885 = vrcp.f32 %v2335_v29 }
 0x3d1   :  { %3887 = vrcp.f32 %v2342_v62 }
 0x3d9   :  { %v3884_v63 = vpop.eup %3883 }
 0x3da   :  { %v3886_v39 = vpop.eup %3885  ;;  %v2346_v19 = vmul.f32 %v3884_v63, %v3882_v60 }
 0x3db   :  { %v2345_v12 = vmul.f32 %v3886_v39, %v5032_v58  ;;  %v3888_v34 = vpop.eup %3887 }
 0x3dd   :  { %v5074_v16 = vadd.f32 %v2346_v19, %v2345_v12 }
 0x3df   :  { %3889 = vtanh.f32 %v5074_v16 }
 0x3e9   :  { %v3890_v13 = vpop.eup %3889 }
 0x3ea   :  { %v2349_v57 = vmul.f32 %v3890_v13, %v3888_v34 }
 0x3ec   :  { %v2355_v56 = vpack.c.bf16 %v2349_v57, %v2349_v57 }
 0x3ee   :  { %2389 = vmatmul.mubr.bf16.vlgmr.msra.gmra.mrb[28].mxu0 %v2355_v56  ;;  %2430 = vmatmul.mubr.bf16.vlgmr.msra.gmra.mrb[28].mxu1 %v2355_v56 }
 0x3ef   :  { %2473 = vmatpush1.bf16.msra.mxu0 %v4688_v20  ;;  %2514 = vmatpush1.bf16.msra.mxu1 %v4693_v21 }
 0x3f0   :  { %2474 = vmatprep.subr.bf16.mxu0 %v4700_v22  ;;  %2515 = vmatprep.subr.bf16.mxu1 %v4705_v23 }
 0x3f1   :  { %2504 = vmatprep.mubr.bf16.mxu0 %v5433_v59  ;;  %2545 = vmatprep.mubr.bf16.mxu1 %v5433_v59 }
 0x3f3   :  { %2475 = vmatpush1.bf16.msra.mxu0 %v4715_v25  ;;  %2516 = vmatpush1.bf16.msra.mxu1 %v4720_v26 }
 0x3f4   :  { %2476 = vmatprep.subr.bf16.mxu0 %v4727_v27  ;;  %2517 = vmatprep.subr.bf16.mxu1 %v4732_v28 }
 0x3f7   :  { %2477 = vmatpush1.bf16.msra.mxu0 %v4742_v30  ;;  %2518 = vmatpush1.bf16.msra.mxu1 %v4747_v31 }
 0x3f8   :  { %2478 = vmatprep.subr.bf16.mxu0 %v4754_v32  ;;  %2519 = vmatprep.subr.bf16.mxu1 %v4759_v33 }
 0x3fb   :  { %2479 = vmatpush1.bf16.msra.mxu0 %v4769_v35  ;;  %2520 = vmatpush1.bf16.msra.mxu1 %v4774_v36 }
 0x3fc   :  { %2480 = vmatprep.subr.bf16.mxu0 %v4781_v37  ;;  %2521 = vmatprep.subr.bf16.mxu1 %v4786_v38 }
 0x3ff   :  { %2481 = vmatpush1.bf16.msra.mxu0 %v4796_v40  ;;  %2522 = vmatpush1.bf16.msra.mxu1 %v4801_v41 }
 0x400   :  { %2482 = vmatprep.subr.bf16.mxu0 %v4808_v42  ;;  %2523 = vmatprep.subr.bf16.mxu1 %v4813_v43 }
 0x403   :  { %2483 = vmatpush1.bf16.msra.mxu0 %v4823_v45  ;;  %2524 = vmatpush1.bf16.msra.mxu1 %v4828_v46 }
 0x404   :  { %2484 = vmatprep.subr.bf16.mxu0 %v4835_v47  ;;  %2525 = vmatprep.subr.bf16.mxu1 %v4840_v48 }
 0x407   :  { %2485 = vmatpush1.bf16.msra.mxu0 %v4850_v50  ;;  %2526 = vmatpush1.bf16.msra.mxu1 %v4855_v51 }
 0x408   :  { %2486 = vmatprep.subr.bf16.mxu0 %v4862_v52  ;;  %2527 = vmatprep.subr.bf16.mxu1 %v4867_v53 }
 0x40b   :  { %2487 = vmatpush1.bf16.msra.mxu0 %v4874_v54  ;;  %2528 = vmatpush1.bf16.msra.mxu1 %v4879_v55 }
 0x40c   :  { %2588 = vmatprep.subr.bf16.mxu0 %v4675_v17  ;;  %2629 = vmatprep.subr.bf16.mxu1 %v4680_v18 }
 0x4c1   :  { %v2390_v58 = vpop.f32.mrb[28].mxu0  ;;  %v2431_v61 = vpop.f32.mrb[28].mxu1 }
 0x4c2   :  { %v2438_v9 = vadd.f32 %v5436_v8, %v2390_v58  ;;  %v2440_v1 = vadd.f32 %v5437_v0, %v2431_v61  ;;  %v2392_v2 = vpop.f32.mrb[29].mxu0  ;;  %v2433_v3 = vpop.f32.mrb[29].mxu1 }
 0x4c3   :  { %v2439_v5 = vadd.f32 %v5438_v4, %v2392_v2  ;;  %v2441_v7 = vadd.f32 %v5439_v6, %v2433_v3  ;;  %v2394_v49 = vpop.f32.mrb[30].mxu0  ;;  %v2435_v10 = vpop.f32.mrb[30].mxu1 }
 0x4c4   :  { %v3310_v11 = vmul.f32 -1.442695, %v2438_v9  ;;  %v2395_v14 = vpop.f32.mrb[31].mxu0  ;;  %v2436_v44 = vpop.f32.mrb[31].mxu1 }
 0x4c5   :  { %v3311_v24 = vmul.f32 -1.442695, %v2439_v5  ;;  %v3312_v29 = vmul.f32 -1.442695, %v2441_v7 }
 0x4c6   :  { %3891 = vpow2.f32 %v3310_v11 }
 0x4c7   :  { %3893 = vpow2.f32 %v3311_v24  ;;  %v5164_v24 = vld [vmem:[%s5404_s2] ss:$16 sps:$4 sm:$0xff]  }
 0x4c8   :  { %3895 = vpow2.f32 %v3312_v29  ;;  %v5170_v29 = vld [vmem:[%s5404_s2 + $0x8] ss:$16 sps:$4 sm:$0xff]  }
 0x4c9   :  { %3897 = vtanh.f32 %v2440_v1 }
 0x4d0   :  { %v3892_v15 = vpop.eup %3891 }
 0x4d1   :  { %v3894_v60 = vpop.eup %3893  ;;  %v2445_v63 = vadd.f32 1.0, %v3892_v15  ;;  %v5176_v15 = vld [vmem:[%s5404_s2 + $0x24] ss:$16 sps:$4 sm:$0xff]  }
 0x4d2   :  { %v2451_v39 = vadd.f32 1.0, %v3894_v60  ;;  %v3896_v19 = vpop.eup %3895  ;;  %v5182_v60 = vld [vmem:[%s5404_s2 + $0x2c] ss:$16 sps:$4 sm:$0xff]  }
 0x4d3   :  { %3899 = vrcp.f32 %v2445_v63  ;;  %v3898_v62 = vpop.eup %3897  ;;  %v2458_v57 = vadd.f32 1.0, %v3896_v19  ;;  %v5190_v63 = vld [vmem:[%s5404_s2 + $0x20] ss:$16 sps:$4 sm:$0xff]   ;;  %v5202_v19 = vld [vmem:[%s5404_s2 + $0x44] ss:$16 sps:$4 sm:$0xff]  }
 0x4d4   :  { %3901 = vrcp.f32 %v2451_v39  ;;  %v5196_v39 = vld [vmem:[%s5404_s2 + $0x28] ss:$16 sps:$4 sm:$0xff]  }
 0x4d5   :  { %3903 = vrcp.f32 %v2458_v57  ;;  %v5232_v57 = vld [vmem:[%s5404_s2 + $0x6c] ss:$16 sps:$4 sm:$0xff]  }
 0x4dd   :  { %v3900_v12 = vpop.eup %3899 }
 0x4de   :  { %v3902_v34 = vpop.eup %3901  ;;  %v2462_v13 = vmul.f32 %v3900_v12, %v3898_v62  ;;  %v5208_v62 = vld [vmem:[%s5404_s2 + $0x4c] ss:$16 sps:$4 sm:$0xff]   ;;  %v5214_v12 = vld [vmem:[%s5404_s2 + $0x40] ss:$16 sps:$4 sm:$0xff]  }
 0x4df   :  { %v2461_v56 = vmul.f32 %v3902_v34, %v5074_v16  ;;  %v3904_v61 = vpop.eup %3903  ;;  %v5220_v34 = vld [vmem:[%s5404_s2 + $0x48] ss:$16 sps:$4 sm:$0xff]  }
 0x4e1   :  { %v5116_v58 = vadd.f32 %v2462_v13, %v2461_v56  ;;  %v5226_v13 = vld [vmem:[%s5404_s2 + $0x64] ss:$16 sps:$4 sm:$0xff]   ;;  %v5238_v56 = vld [vmem:[%s5404_s2 + $0x60] ss:$16 sps:$4 sm:$0xff]  }
 0x4e3   :  { %3905 = vtanh.f32 %v5116_v58 }
 0x4ed   :  { %v3906_v8 = vpop.eup %3905 }
 0x4ee   :  { %v2465_v9 = vmul.f32 %v3906_v8, %v3904_v61  ;;  %v5250_v61 = vld [vmem:[%s5404_s2 + $0x84] ss:$16 sps:$4 sm:$0xff]   ;;  %v5256_v8 = vld [vmem:[%s5404_s2 + $0x8c] ss:$16 sps:$4 sm:$0xff]  }
 0x4f0   :  { %v2471_v0 = vpack.c.bf16 %v2465_v9, %v2465_v9  ;;  %v5262_v9 = vld [vmem:[%s5404_s2 + $0x80] ss:$16 sps:$4 sm:$0xff]  }
 0x4f2   :  { %2505 = vmatmul.mubr.bf16.vlgmr.msra.gmra.mrb[32].mxu0 %v2471_v0  ;;  %2546 = vmatmul.mubr.bf16.vlgmr.msra.gmra.mrb[32].mxu1 %v2471_v0  ;;  %v5268_v0 = vld [vmem:[%s5404_s2 + $0x88] ss:$16 sps:$4 sm:$0xff]  }
 0x4f3   :  { %2589 = vmatpush1.bf16.msra.mxu0 %v4688_v20  ;;  %2630 = vmatpush1.bf16.msra.mxu1 %v4693_v21 }
 0x4f4   :  { %2590 = vmatprep.subr.bf16.mxu0 %v4700_v22  ;;  %2631 = vmatprep.subr.bf16.mxu1 %v4705_v23  ;;  %v5440_v22 = vld [vmem:[#allocation9_spill] sm:$0xff] }
 0x4f5   :  { %2620 = vmatprep.mubr.bf16.mxu0 %v5433_v59  ;;  %2661 = vmatprep.mubr.bf16.mxu1 %v5433_v59 }
 0x4f7   :  { %2591 = vmatpush1.bf16.msra.mxu0 %v4715_v25  ;;  %2632 = vmatpush1.bf16.msra.mxu1 %v4720_v26  ;;  %v5441_v25 = vld [vmem:[#allocation10_spill] sm:$0xff] }
 0x4f8   :  { %2592 = vmatprep.subr.bf16.mxu0 %v4727_v27  ;;  %2633 = vmatprep.subr.bf16.mxu1 %v4732_v28 }
 0x4fb   :  { %2593 = vmatpush1.bf16.msra.mxu0 %v4742_v30  ;;  %2634 = vmatpush1.bf16.msra.mxu1 %v4747_v31  ;;  %v5442_v30 = vld [vmem:[#allocation11_spill] sm:$0xff] }
 0x4fc   :  { %2594 = vmatprep.subr.bf16.mxu0 %v4754_v32  ;;  %2635 = vmatprep.subr.bf16.mxu1 %v4759_v33  ;;  %v5443_v32 = vld [vmem:[#allocation12_spill] sm:$0xff] }
 0x4ff   :  { %2595 = vmatpush1.bf16.msra.mxu0 %v4769_v35  ;;  %2636 = vmatpush1.bf16.msra.mxu1 %v4774_v36 }
 0x500   :  { %2596 = vmatprep.subr.bf16.mxu0 %v4781_v37  ;;  %2637 = vmatprep.subr.bf16.mxu1 %v4786_v38 }
 0x503   :  { %2597 = vmatpush1.bf16.msra.mxu0 %v4796_v40  ;;  %2638 = vmatpush1.bf16.msra.mxu1 %v4801_v41 }
 0x504   :  { %2598 = vmatprep.subr.bf16.mxu0 %v4808_v42  ;;  %2639 = vmatprep.subr.bf16.mxu1 %v4813_v43 }
 0x507   :  { %2599 = vmatpush1.bf16.msra.mxu0 %v4823_v45  ;;  %2640 = vmatpush1.bf16.msra.mxu1 %v4828_v46 }
 0x508   :  { %2600 = vmatprep.subr.bf16.mxu0 %v4835_v47  ;;  %2641 = vmatprep.subr.bf16.mxu1 %v4840_v48 }
 0x50b   :  { %2601 = vmatpush1.bf16.msra.mxu0 %v4850_v50  ;;  %2642 = vmatpush1.bf16.msra.mxu1 %v4855_v51 }
 0x50c   :  { %2602 = vmatprep.subr.bf16.mxu0 %v4862_v52  ;;  %2643 = vmatprep.subr.bf16.mxu1 %v4867_v53 }
 0x50f   :  { %2603 = vmatpush1.bf16.msra.mxu0 %v4874_v54  ;;  %2644 = vmatpush1.bf16.msra.mxu1 %v4879_v55 }
 0x510   :  { %2704 = vmatprep.subr.bf16.mxu0 %v4675_v17  ;;  %2745 = vmatprep.subr.bf16.mxu1 %v4680_v18 }
 0x5c5   :  { %v2506_v20 = vpop.f32.mrb[32].mxu0  ;;  %v2547_v21 = vpop.f32.mrb[32].mxu1 }
 0x5c6   :  { %v2554_v23 = vadd.f32 %v5440_v22, %v2506_v20  ;;  %v2556_v26 = vadd.f32 %v5441_v25, %v2547_v21  ;;  %v2508_v27 = vpop.f32.mrb[33].mxu0  ;;  %v2549_v28 = vpop.f32.mrb[33].mxu1  ;;  %v5274_v20 = vld [vmem:[%s5404_s2 + $0xa4] ss:$16 sps:$4 sm:$0xff]   ;;  %v5280_v21 = vld [vmem:[%s5404_s2 + $0xac] ss:$16 sps:$4 sm:$0xff]  }
 0x5c7   :  { %v2555_v31 = vadd.f32 %v5442_v30, %v2508_v27  ;;  %v2557_v33 = vadd.f32 %v5443_v32, %v2549_v28  ;;  %v2510_v35 = vpop.f32.mrb[34].mxu0  ;;  %v2551_v36 = vpop.f32.mrb[34].mxu1  ;;  %v5447_v25 = vld [vmem:[#allocation16_spill] sm:$0xff] }
 0x5c8   :  { %v3313_v37 = vmul.f32 -1.442695, %v2554_v23  ;;  %v2511_v38 = vpop.f32.mrb[35].mxu0  ;;  %v2552_v40 = vpop.f32.mrb[35].mxu1  ;;  %v5446_v23 = vld [vmem:[#allocation15_spill] sm:$0xff] }
 0x5c9   :  { %v3314_v17 = vmul.f32 -1.442695, %v2555_v31  ;;  %v3315_v18 = vmul.f32 -1.442695, %v2557_v33 }
 0x5ca   :  { %3907 = vpow2.f32 %v3313_v37 }
 0x5cb   :  { %3909 = vpow2.f32 %v3314_v17 }
 0x5cc   :  { %3911 = vpow2.f32 %v3315_v18 }
 0x5cd   :  { %3913 = vtanh.f32 %v2556_v26 }
 0x5d4   :  { %v3908_v41 = vpop.eup %3907 }
 0x5d5   :  { %v3910_v42 = vpop.eup %3909  ;;  %v2561_v43 = vadd.f32 1.0, %v3908_v41 }
 0x5d6   :  { %v2567_v16 = vadd.f32 1.0, %v3910_v42  ;;  %v3912_v1 = vpop.eup %3911 }
 0x5d7   :  { %3915 = vrcp.f32 %v2561_v43  ;;  %v3914_v2 = vpop.eup %3913  ;;  %v2574_v6 = vadd.f32 1.0, %v3912_v1 }
 0x5d8   :  { %3917 = vrcp.f32 %v2567_v16 }
 0x5d9   :  { %3919 = vrcp.f32 %v2574_v6 }
 0x5e1   :  { %v3916_v3 = vpop.eup %3915 }
 0x5e2   :  { %v3918_v4 = vpop.eup %3917  ;;  %v2578_v5 = vmul.f32 %v3916_v3, %v3914_v2 }
 0x5e3   :  { %v2577_v7 = vmul.f32 %v3918_v4, %v5116_v58  ;;  %v3920_v10 = vpop.eup %3919  ;;  %v5244_v58 = vld [vmem:[%s5404_s2 + $0x68] ss:$16 sps:$4 sm:$0xff]  }
 0x5e5   :  { %v5158_v49 = vadd.f32 %v2578_v5, %v2577_v7  ;;  %v3998_v7 = vld [vmem:[%s5404_s2 + $0xa8] ss:$16 sps:$4 sm:$0xff]  }
 0x5e7   :  { %3921 = vtanh.f32 %v5158_v49 }
 0x5f1   :  { %v3922_v11 = vpop.eup %3921 }
 0x5f2   :  { %v2581_v14 = vmul.f32 %v3922_v11, %v3920_v10  ;;  %v4000_v10 = vld [vmem:[%s5404_s2 + $0xcc] ss:$16 sps:$4 sm:$0xff]   ;;  %v4001_v11 = vld [vmem:[%s5404_s2 + $0xc0] ss:$16 sps:$4 sm:$0xff]  }
 0x5f4   :  { %v2587_v44 = vpack.c.bf16 %v2581_v14, %v2581_v14  ;;  %v4002_v14 = vld [vmem:[%s5404_s2 + $0xc8] ss:$16 sps:$4 sm:$0xff]  }
 0x5f6   :  { %2621 = vmatmul.mubr.bf16.vlgmr.msra.gmra.mrb[36].mxu0 %v2587_v44  ;;  %2662 = vmatmul.mubr.bf16.vlgmr.msra.gmra.mrb[36].mxu1 %v2587_v44  ;;  %v4003_v44 = vld [vmem:[%s5404_s2 + $0xe4] ss:$16 sps:$4 sm:$0xff]  }
 0x5f7   :  { %2705 = vmatpush1.bf16.msra.mxu0 %v5164_v24  ;;  %2746 = vmatpush1.bf16.msra.mxu1 %v5170_v29 }
 0x5f8   :  { %2706 = vmatprep.subr.bf16.mxu0 %v5176_v15  ;;  %2747 = vmatprep.subr.bf16.mxu1 %v5182_v60 }
 0x5f9   :  { %2736 = vmatprep.mubr.bf16.mxu0 %v5433_v59  ;;  %2777 = vmatprep.mubr.bf16.mxu1 %v5433_v59 }
 0x5fb   :  { %2707 = vmatpush1.bf16.msra.mxu0 %v5190_v63  ;;  %2748 = vmatpush1.bf16.msra.mxu1 %v5196_v39 }
 0x5fc   :  { %2708 = vmatprep.subr.bf16.mxu0 %v5202_v19  ;;  %2749 = vmatprep.subr.bf16.mxu1 %v5208_v62 }
 0x5ff   :  { %2709 = vmatpush1.bf16.msra.mxu0 %v5214_v12  ;;  %2750 = vmatpush1.bf16.msra.mxu1 %v5220_v34 }
 0x600   :  { %2710 = vmatprep.subr.bf16.mxu0 %v5226_v13  ;;  %2751 = vmatprep.subr.bf16.mxu1 %v5232_v57 }
 0x603   :  { %2711 = vmatpush1.bf16.msra.mxu0 %v5238_v56  ;;  %2752 = vmatpush1.bf16.msra.mxu1 %v5244_v58 }
 0x604   :  { %2712 = vmatprep.subr.bf16.mxu0 %v5250_v61  ;;  %2753 = vmatprep.subr.bf16.mxu1 %v5256_v8 }
 0x607   :  { %2713 = vmatpush1.bf16.msra.mxu0 %v5262_v9  ;;  %2754 = vmatpush1.bf16.msra.mxu1 %v5268_v0 }
 0x608   :  { %2714 = vmatprep.subr.bf16.mxu0 %v5274_v20  ;;  %2755 = vmatprep.subr.bf16.mxu1 %v5280_v21 }
 0x60b   :  { %2715 = vmatpush1.bf16.msra.mxu0 %v4823_v45  ;;  %2756 = vmatpush1.bf16.msra.mxu1 %v4828_v46  ;;  %v3995_v45 = vld [vmem:[%s5404_s2 + $0x4] ss:$16 sps:$4 sm:$0xff]   ;;  %v3996_v46 = vld [vmem:[%s5404_s2 + $0xc] ss:$16 sps:$4 sm:$0xff]  }
 0x60c   :  { %2716 = vmatprep.subr.bf16.mxu0 %v4835_v47  ;;  %2757 = vmatprep.subr.bf16.mxu1 %v4840_v48 }
 0x60f   :  { %2717 = vmatpush1.bf16.msra.mxu0 %v4850_v50  ;;  %2758 = vmatpush1.bf16.msra.mxu1 %v4855_v51  ;;  %v5444_v50 = vld [vmem:[#allocation13_spill] sm:$0xff] }
 0x610   :  { %2718 = vmatprep.subr.bf16.mxu0 %v4862_v52  ;;  %2759 = vmatprep.subr.bf16.mxu1 %v4867_v53  ;;  %v5445_v52 = vld [vmem:[#allocation14_spill] sm:$0xff] }
 0x613   :  { %2719 = vmatpush1.bf16.msra.mxu0 %v4874_v54  ;;  %2760 = vmatpush1.bf16.msra.mxu1 %v4879_v55 }
 0x614   :  { %2820 = vmatprep.subr.bf16.mxu0 %v3995_v45  ;;  %2861 = vmatprep.subr.bf16.mxu1 %v3996_v46 }
 0x6c9   :  { %v2622_v47 = vpop.f32.mrb[36].mxu0  ;;  %v2663_v48 = vpop.f32.mrb[36].mxu1 }
 0x6ca   :  { %v2670_v51 = vadd.f32 %v5444_v50, %v2622_v47  ;;  %v2672_v53 = vadd.f32 %v5445_v52, %v2663_v48  ;;  %v2624_v22 = vpop.f32.mrb[37].mxu0  ;;  %v2665_v54 = vpop.f32.mrb[37].mxu1 }
 0x6cb   :  { %v2671_v55 = vadd.f32 %v5446_v23, %v2624_v22  ;;  %v2673_v26 = vadd.f32 %v5447_v25, %v2665_v54  ;;  %v2626_v27 = vpop.f32.mrb[38].mxu0  ;;  %v2667_v28 = vpop.f32.mrb[38].mxu1 }
 0x6cc   :  { %v3316_v30 = vmul.f32 -1.442695, %v2670_v51  ;;  %v2627_v31 = vpop.f32.mrb[39].mxu0  ;;  %v2668_v32 = vpop.f32.mrb[39].mxu1 }
 0x6cd   :  { %v3317_v33 = vmul.f32 -1.442695, %v2671_v55  ;;  %v3318_v35 = vmul.f32 -1.442695, %v2673_v26  ;;  %v3835_v32 = vld [vmem:[%s5406_s4] sm:$0xff]  }
 0x6ce   :  { %3923 = vpow2.f32 %v3316_v30 }
 0x6cf   :  { %3925 = vpow2.f32 %v3317_v33  ;;  %v4008_v33 = vmov 0.0  }
 0x6d0   :  { %3927 = vpow2.f32 %v3318_v35  ;;  %v3836_v35 = vld [vmem:[%s5406_s4 + $0x8] sm:$0xff]  }
 0x6d1   :  { %3929 = vtanh.f32 %v2672_v53 }
 0x6d8   :  { %v3924_v36 = vpop.eup %3923 }
 0x6d9   :  { %v3926_v37 = vpop.eup %3925  ;;  %v2677_v38 = vadd.f32 1.0, %v3924_v36  ;;  %v3837_v36 = vld [vmem:[%s5406_s4 + $0x10] sm:$0xff]  }
 0x6da   :  { %v2683_v40 = vadd.f32 1.0, %v3926_v37  ;;  %v3928_v17 = vpop.eup %3927  ;;  %v3838_v37 = vld [vmem:[%s5406_s4 + $0x18] sm:$0xff]  }
 0x6db   :  { %3931 = vrcp.f32 %v2677_v38  ;;  %v3930_v18 = vpop.eup %3929  ;;  %v2690_v16 = vadd.f32 1.0, %v3928_v17  ;;  %v3839_v38 = vld [vmem:[%s5406_s4 + $0x20] sm:$0xff]   ;;  %v3841_v17 = vld [vmem:[%s5406_s4 + $0x30] sm:$0xff]  }
 0x6dc   :  { %3933 = vrcp.f32 %v2683_v40  ;;  %v3840_v40 = vld [vmem:[%s5406_s4 + $0x28] sm:$0xff]  }
 0x6dd   :  { %3935 = vrcp.f32 %v2690_v16 }
 0x6e5   :  { %v3932_v41 = vpop.eup %3931 }
 0x6e6   :  { %v3934_v42 = vpop.eup %3933  ;;  %v2694_v43 = vmul.f32 %v3932_v41, %v3930_v18  ;;  %v3842_v18 = vld [vmem:[%s5406_s4 + $0x38] sm:$0xff]  }
 0x6e7   :  { %v2693_v1 = vmul.f32 %v3934_v42, %v5158_v49  ;;  %v3936_v3 = vpop.eup %3935  ;;  %v3999_v49 = vld [vmem:[%s5404_s2 + $0xc4] ss:$16 sps:$4 sm:$0xff]  }
 0x6e9   :  { %v5304_v2 = vadd.f32 %v2694_v43, %v2693_v1  ;;  %v5452_v43 = vld [vmem:[#allocation21_spill] sm:$0xff]  ;;  %v5453_v1 = vld [vmem:[#allocation22_spill] sm:$0xff] }
 0x6eb   :  { %3937 = vtanh.f32 %v5304_v2 }
 0x6f5   :  { %v3938_v4 = vpop.eup %3937 }
 0x6f6   :  { %v2697_v5 = vmul.f32 %v3938_v4, %v3936_v3 }
 0x6f8   :  { %v2703_v6 = vpack.c.bf16 %v2697_v5, %v2697_v5  ;;  %v5454_v5 = vld [vmem:[#allocation23_spill] sm:$0xff] }
 0x6fa   :  { %2737 = vmatmul.mubr.bf16.vlgmr.msra.gmra.mrb[40].mxu0 %v2703_v6  ;;  %2778 = vmatmul.mubr.bf16.vlgmr.msra.gmra.mrb[40].mxu1 %v2703_v6 }
 0x6fb   :  { %2821 = vmatpush1.bf16.msra.mxu0 %v5164_v24  ;;  %2862 = vmatpush1.bf16.msra.mxu1 %v5170_v29  ;;  %v4004_v24 = vld [vmem:[%s5404_s2 + $0xec] ss:$16 sps:$4 sm:$0xff]   ;;  %v4005_v29 = vld [vmem:[%s5404_s2 + $0xe0] ss:$16 sps:$4 sm:$0xff]  }
 0x6fc   :  { %2822 = vmatprep.subr.bf16.mxu0 %v5176_v15  ;;  %2863 = vmatprep.subr.bf16.mxu1 %v5182_v60  ;;  %v4006_v15 = vld [vmem:[%s5404_s2 + $0xe8] ss:$16 sps:$4 sm:$0xff]  }
 0x6fd   :  { %2852 = vmatprep.mubr.bf16.mxu0 %v5433_v59  ;;  %2893 = vmatprep.mubr.bf16.mxu1 %v5433_v59  ;;  %v3997_v59 = vld [vmem:[%s5404_s2 + $0xa0] ss:$16 sps:$4 sm:$0xff]  }
 0x6ff   :  { %2823 = vmatpush1.bf16.msra.mxu0 %v5190_v63  ;;  %2864 = vmatpush1.bf16.msra.mxu1 %v5196_v39  ;;  %v5448_v39 = vld [vmem:[#allocation17_spill] sm:$0xff] }
 0x700   :  { %2824 = vmatprep.subr.bf16.mxu0 %v5202_v19  ;;  %2865 = vmatprep.subr.bf16.mxu1 %v5208_v62  ;;  %v5449_v62 = vld [vmem:[#allocation18_spill] sm:$0xff] }
 0x703   :  { %2825 = vmatpush1.bf16.msra.mxu0 %v5214_v12  ;;  %2866 = vmatpush1.bf16.msra.mxu1 %v5220_v34 }
 0x704   :  { %2826 = vmatprep.subr.bf16.mxu0 %v5226_v13  ;;  %2867 = vmatprep.subr.bf16.mxu1 %v5232_v57  ;;  %v5450_v57 = vld [vmem:[#allocation19_spill] sm:$0xff] }
 0x707   :  { %2827 = vmatpush1.bf16.msra.mxu0 %v5238_v56  ;;  %2868 = vmatpush1.bf16.msra.mxu1 %v5244_v58  ;;  %v5451_v58 = vld [vmem:[#allocation20_spill] sm:$0xff] }
 0x708   :  { %2828 = vmatprep.subr.bf16.mxu0 %v5250_v61  ;;  %2869 = vmatprep.subr.bf16.mxu1 %v5256_v8 }
 0x70b   :  { %2829 = vmatpush1.bf16.msra.mxu0 %v5262_v9  ;;  %2870 = vmatpush1.bf16.msra.mxu1 %v5268_v0 }
 0x70c   :  { %2830 = vmatprep.subr.bf16.mxu0 %v5274_v20  ;;  %2871 = vmatprep.subr.bf16.mxu1 %v5280_v21 }
 0x70f   :  { %2831 = vmatpush1.bf16.msra.mxu0 %v3997_v59  ;;  %2872 = vmatpush1.bf16.msra.mxu1 %v3998_v7  ;;  %v5455_v59 = vld [vmem:[#allocation24_spill] sm:$0xff] }
 0x710   :  { %2832 = vmatprep.subr.bf16.mxu0 %v3999_v49  ;;  %2873 = vmatprep.subr.bf16.mxu1 %v4000_v10 }
 0x713   :  { %2833 = vmatpush1.bf16.msra.mxu0 %v4001_v11  ;;  %2874 = vmatpush1.bf16.msra.mxu1 %v4002_v14 }
 0x714   :  { %2834 = vmatprep.subr.bf16.mxu0 %v4003_v44  ;;  %2875 = vmatprep.subr.bf16.mxu1 %v4004_v24 }
 0x717   :  { %2835 = vmatpush1.bf16.msra.mxu0 %v4005_v29  ;;  %2876 = vmatpush1.bf16.msra.mxu1 %v4006_v15 }
 0x718   :  { %3344 = vmatprep.subr.bf16.mxu0 %v4008_v33 }
 0x7cd   :  { %v2738_v60 = vpop.f32.mrb[40].mxu0  ;;  %v2779_v63 = vpop.f32.mrb[40].mxu1 }
 0x7ce   :  { %v2786_v19 = vadd.f32 %v5448_v39, %v2738_v60  ;;  %v2788_v12 = vadd.f32 %v5449_v62, %v2779_v63  ;;  %v2740_v34 = vpop.f32.mrb[41].mxu0  ;;  %v2781_v13 = vpop.f32.mrb[41].mxu1 }
 0x7cf   :  { %v2787_v56 = vadd.f32 %v5450_v57, %v2740_v34  ;;  %v2789_v61 = vadd.f32 %v5451_v58, %v2781_v13  ;;  %v2742_v8 = vpop.f32.mrb[42].mxu0  ;;  %v2783_v9 = vpop.f32.mrb[42].mxu1 }
 0x7d0   :  { %v3319_v0 = vmul.f32 -1.442695, %v2786_v19  ;;  %v2743_v20 = vpop.f32.mrb[43].mxu0  ;;  %v2784_v21 = vpop.f32.mrb[43].mxu1 }
 0x7d1   :  { %v3320_v45 = vmul.f32 -1.442695, %v2787_v56  ;;  %v3321_v46 = vmul.f32 -1.442695, %v2789_v61  ;;  %v3325_v20 = vld [vmem:[%s5407_s5] ss:$0 sm:$0xff] }
 0x7d2   :  { %3939 = vpow2.f32 %v3319_v0 }
 0x7d3   :  { %3941 = vpow2.f32 %v3320_v45 }
 0x7d4   :  { %3943 = vpow2.f32 %v3321_v46 }
 0x7d5   :  { %3945 = vtanh.f32 %v2788_v12 }
 0x7dc   :  { %v3940_v47 = vpop.eup %3939 }
 0x7dd   :  { %v3942_v48 = vpop.eup %3941  ;;  %v2793_v50 = vadd.f32 1.0, %v3940_v47 }
 0x7de   :  { %v2799_v51 = vadd.f32 1.0, %v3942_v48  ;;  %v3944_v52 = vpop.eup %3943 }
 0x7df   :  { %3947 = vrcp.f32 %v2793_v50  ;;  %v3946_v53 = vpop.eup %3945  ;;  %v2806_v55 = vadd.f32 1.0, %v3944_v52 }
 0x7e0   :  { %3949 = vrcp.f32 %v2799_v51 }
 0x7e1   :  { %3951 = vrcp.f32 %v2806_v55 }
 0x7e9   :  { %v3948_v22 = vpop.eup %3947 }
 0x7ea   :  { %v3950_v54 = vpop.eup %3949  ;;  %v2810_v23 = vmul.f32 %v3948_v22, %v3946_v53 }
 0x7eb   :  { %v2809_v25 = vmul.f32 %v3950_v54, %v5304_v2  ;;  %v3952_v27 = vpop.eup %3951 }
 0x7ed   :  { %v5364_v26 = vadd.f32 %v2810_v23, %v2809_v25 }
 0x7ef   :  { %3953 = vtanh.f32 %v5364_v26 }
 0x7f9   :  { %v3954_v28 = vpop.eup %3953 }
 0x7fa   :  { %v2813_v30 = vmul.f32 %v3954_v28, %v3952_v27 }
 0x7fc   :  { %v2819_v31 = vpack.c.bf16 %v2813_v30, %v2813_v30 }
 0x7fe   :  { %2853 = vmatmul.mubr.bf16.vlgmr.msra.gmra.mrb[44].mxu0 %v2819_v31  ;;  %2894 = vmatmul.mubr.bf16.vlgmr.msra.gmra.mrb[44].mxu1 %v2819_v31 }
 0x7ff   :  { %3345 = vmatpush3.bf16.msra.mxu0 %v3835_v32  ;;  %3360 = vmatprep.mubr.msk.bf16.mxu0 %vm4009_vm0, %v4008_v33 }
 0x800   :  { %3346 = vmatprep.subr.bf16.mxu0 %v4008_v33 }
 0x803   :  { %3347 = vmatpush3.bf16.msra.mxu0 %v3836_v35 }
 0x804   :  { %3348 = vmatprep.subr.bf16.mxu0 %v4008_v33 }
 0x807   :  { %3349 = vmatpush3.bf16.msra.mxu0 %v3837_v36 }
 0x808   :  { %3350 = vmatprep.subr.bf16.mxu0 %v4008_v33 }
 0x80b   :  { %3351 = vmatpush3.bf16.msra.mxu0 %v3838_v37 }
 0x80c   :  { %3352 = vmatprep.subr.bf16.mxu0 %v4008_v33 }
 0x80f   :  { %3353 = vmatpush3.bf16.msra.mxu0 %v3839_v38 }
 0x810   :  { %3354 = vmatprep.subr.bf16.mxu0 %v4008_v33 }
 0x813   :  { %3355 = vmatpush3.bf16.msra.mxu0 %v3840_v40 }
 0x814   :  { %3356 = vmatprep.subr.bf16.mxu0 %v4008_v33 }
 0x817   :  { %3357 = vmatpush3.bf16.msra.mxu0 %v3841_v17 }
 0x818   :  { %3358 = vmatprep.subr.bf16.mxu0 %v4008_v33 }
 0x81b   :  { %3359 = vmatpush3.bf16.msra.mxu0 %v3842_v18 }
 0x8d1   :  { %v2854_v41 = vpop.f32.mrb[44].mxu0  ;;  %v2895_v42 = vpop.f32.mrb[44].mxu1 }
 0x8d2   :  { %v2902_v16 = vadd.f32 %v5452_v43, %v2854_v41  ;;  %v2904_v2 = vadd.f32 %v5453_v1, %v2895_v42  ;;  %v2856_v3 = vpop.f32.mrb[45].mxu0  ;;  %v2897_v4 = vpop.f32.mrb[45].mxu1 }
 0x8d3   :  { %v2903_v6 = vadd.f32 %v5454_v5, %v2856_v3  ;;  %v2905_v7 = vadd.f32 %v5455_v59, %v2897_v4  ;;  %v2858_v49 = vpop.f32.mrb[46].mxu0  ;;  %v2899_v10 = vpop.f32.mrb[46].mxu1 }
 0x8d4   :  { %v3322_v11 = vmul.f32 -1.442695, %v2902_v16  ;;  %v2859_v14 = vpop.f32.mrb[47].mxu0  ;;  %v2900_v44 = vpop.f32.mrb[47].mxu1 }
 0x8d5   :  { %v3323_v24 = vmul.f32 -1.442695, %v2903_v6  ;;  %v3324_v29 = vmul.f32 -1.442695, %v2905_v7 }
 0x8d6   :  { %3955 = vpow2.f32 %v3322_v11 }
 0x8d7   :  { %3957 = vpow2.f32 %v3323_v24 }
 0x8d8   :  { %3959 = vpow2.f32 %v3324_v29 }
 0x8d9   :  { %3961 = vtanh.f32 %v2904_v2 }
 0x8e0   :  { %v3956_v15 = vpop.eup %3955 }
 0x8e1   :  { %v3958_v60 = vpop.eup %3957  ;;  %v2909_v63 = vadd.f32 1.0, %v3956_v15 }
 0x8e2   :  { %v2915_v39 = vadd.f32 1.0, %v3958_v60  ;;  %v3960_v19 = vpop.eup %3959 }
 0x8e3   :  { %3963 = vrcp.f32 %v2909_v63  ;;  %v3962_v62 = vpop.eup %3961  ;;  %v2922_v57 = vadd.f32 1.0, %v3960_v19 }
 0x8e4   :  { %3965 = vrcp.f32 %v2915_v39 }
 0x8e5   :  { %3967 = vrcp.f32 %v2922_v57 }
 0x8ed   :  { %v3964_v12 = vpop.eup %3963 }
 0x8ee   :  { %v3966_v34 = vpop.eup %3965  ;;  %v2926_v13 = vmul.f32 %v3964_v12, %v3962_v62 }
 0x8ef   :  { %v2925_v56 = vmul.f32 %v3966_v34, %v5364_v26  ;;  %v3968_v61 = vpop.eup %3967 }
 0x8f1   :  { %v2927_v58 = vadd.f32 %v2926_v13, %v2925_v56 }
 0x8f3   :  { %3969 = vtanh.f32 %v2927_v58 }
 0x8fd   :  { %v3970_v8 = vpop.eup %3969 }
 0x8fe   :  { %v2929_v9 = vmul.f32 %v3970_v8, %v3968_v61 }
 0x900   :  { %v2930_v0 = vpack.c.bf16 %v2929_v9, %v2929_v9 }
 0x902   :  { %3361 = vmatmul.mubr.bf16.vlgmr.msra.gmra.mrb[48].mxu0 %v2930_v0 }
 0x9d5   :  { %v3036_v21 = vpop.f32.mrb[48].mxu0 }
 0x9d6   :  { %v3037_v45 = vadd.f32 %v3325_v20, %v3036_v21  ;;  %v3362_v46 = vpop.f32.mrb[49].mxu0 }
 0x9d7   :  { %v3039_v47 = vpop.f32.mrb[50].mxu0 }
 0x9d8   :  { %v3334_v48 = vmul.f32 -1.442695, %v3037_v45  ;;  %v3363_v50 = vpop.f32.mrb[51].mxu0 }
 0x9da   :  { %3971 = vpow2.f32 %v3334_v48 }
 0x9e4   :  { %v3972_v51 = vpop.eup %3971 }
 0x9e5   :  { %v3045_v52 = vadd.f32 1.0, %v3972_v51 }
 0x9e7   :  { %3973 = vrcp.f32 %v3045_v52 }
 0x9f1   :  { %v3974_v53 = vpop.eup %3973 }
 0x9f2   :  { %3048 = vst [vmem:[%s5408_s6] sm:$0xff] %v3974_v53 }

</bundles_post_ra>
